<compile_context>
chip_gen: v7x
topology: tpu7x:2x2x1
jax: 0.10.0
libtpu: 0.0.40
codegen_flags: <defaults>
</compile_context>

<pallas_src>
import functools

import jax
import jax.numpy as jnp
from jax.experimental import pallas as pl
from jax.experimental.pallas import tpu as pltpu


def _initial_layer_kernel(S, h_ref, e_ref, w1_ref, b1_ref, w2_ref, b2_ref,
                          w3_ref, b3_ref, w4_ref, b4_ref,
                          uk_ref, uc_ref, rl_ref):
    BB, SK, din = h_ref.shape          # H block rows ordered (s, k) per sample
    L = e_ref.shape[1]
    K = e_ref.shape[2]
    h2dim = w1_ref.shape[1]            # 2 * ch
    ch = w2_ref.shape[1]

    # ---- fu layer 1: Linear(din -> 2ch) + ReLU, on row-flattened (b, s, k) rows
    h2 = h_ref[...].reshape(BB * SK, din)
    z = jnp.dot(h2, w1_ref[...], preferred_element_type=jnp.float32) + b1_ref[...]
    z = jnp.maximum(z, 0.0)                                             # (BB*S*K, 2ch)
    z3 = z.reshape(BB, SK, h2dim)                                       # (BB, S*K, 2ch)

    # ---- mean over the S sample axis (rows ordered (s, k) inside each sample).
    # Done BEFORE the second (linear) fu layer: mathematically identical and
    # cuts that matmul's rows by S.
    acc = z3[:, 0:K, :]
    for s in range(1, S):
        acc = acc + z3[:, s * K:(s + 1) * K, :]
    zbar = acc * (1.0 / S)                                              # (BB, K, 2ch)

    # ---- fu layer 2: Linear(2ch -> ch)
    uk = (jnp.dot(zbar.reshape(BB * K, h2dim), w2_ref[...],
                  preferred_element_type=jnp.float32) + b2_ref[...]).reshape(BB, K, ch)

    # ---- e_h = L1-normalize(e, dim=2);  rl0 = e_h @ uk
    e = e_ref[...]
    denom = jnp.maximum(jnp.sum(jnp.abs(e), axis=2, keepdims=True), 1e-12)
    eh = e / denom                                                      # (BB, L, K)
    # Tiny per-sample contraction over K -> unrolled VPU broadcast-MAC
    # (avoids BB tiny batched MXU matmuls per grid step).
    rl0 = eh[:, :, 0:1] * uk[:, 0:1, :]
    for k in range(1, K):
        rl0 = rl0 + eh[:, :, k:k + 1] * uk[:, k:k + 1, :]               # (BB, L, ch)

    # ---- f: Linear(ch->ch) -> ReLU -> Linear(ch->ch), row-flattened over (b, l)
    rl2 = rl0.reshape(BB * L, ch)
    z2 = jnp.dot(rl2, w3_ref[...], preferred_element_type=jnp.float32) + b3_ref[...]
    z2 = jnp.maximum(z2, 0.0)
    rl_out = jnp.dot(z2, w4_ref[...], preferred_element_type=jnp.float32) + b4_ref[...]

    # ---- outputs
    uk_ref[...] = uk
    uc_ref[...] = jnp.mean(uk, axis=1)                                  # (BB, ch)
    rl_ref[...] = rl_out.reshape(BB, L, ch)


def initial_layer_forward(H, e, w1, b1, w2, b2, w3, b3, w4, b4, *, block_b=None):
    """H: (B, S, K, in_dim), e: (B, L, K); Linear weights stored (in, out), biases (1, out)."""
    H = H.astype(jnp.float32)
    e = e.astype(jnp.float32)
    B, S, K, din = H.shape
    L = e.shape[1]
    h2dim = w1.shape[1]     # 2 * ch
    ch = w2.shape[1]

    # Pick a batch block: big enough to amortize per-step overhead, 8-aligned so
    # the (bb, ch) output block satisfies the sublane constraint.
    bb = block_b if block_b is not None else min(B, 256)
    if bb >= B:
        bb, nblk, Bp = B, 1, B
    else:
        bb = max(8, (bb // 8) * 8)
        nblk = pl.cdiv(B, bb)
        Bp = nblk * bb
    if Bp != B:
        # zero-padded batch rows are harmless: denom clamps at 1e-12, eh stays 0.
        H = jnp.pad(H, ((0, Bp - B), (0, 0), (0, 0), (0, 0)))
        e = jnp.pad(e, ((0, Bp - B), (0, 0), (0, 0)))

    Hf = H.reshape(Bp, S * K, din)      # rows ordered (s, k) within each sample

    kernel = functools.partial(_initial_layer_kernel, S)

    uk, uc, rl = pl.pallas_call(
        kernel,
        out_shape=(
            jax.ShapeDtypeStruct((Bp, K, ch), jnp.float32),
            jax.ShapeDtypeStruct((Bp, ch), jnp.float32),
            jax.ShapeDtypeStruct((Bp, L, ch), jnp.float32),
        ),
        grid=(nblk,),
        in_specs=[
            pl.BlockSpec((bb, S * K, din), lambda i: (i, 0, 0)),
            pl.BlockSpec((bb, L, K), lambda i: (i, 0, 0)),
            pl.BlockSpec((din, h2dim), lambda i: (0, 0)),
            pl.BlockSpec((1, h2dim), lambda i: (0, 0)),
            pl.BlockSpec((h2dim, ch), lambda i: (0, 0)),
            pl.BlockSpec((1, ch), lambda i: (0, 0)),
            pl.BlockSpec((ch, ch), lambda i: (0, 0)),
            pl.BlockSpec((1, ch), lambda i: (0, 0)),
            pl.BlockSpec((ch, ch), lambda i: (0, 0)),
            pl.BlockSpec((1, ch), lambda i: (0, 0)),
        ],
        out_specs=(
            pl.BlockSpec((bb, K, ch), lambda i: (i, 0, 0)),
            pl.BlockSpec((bb, ch), lambda i: (i, 0)),
            pl.BlockSpec((bb, L, ch), lambda i: (i, 0, 0)),
        ),
        compiler_params=pltpu.CompilerParams(dimension_semantics=("parallel",)),
    )(Hf, e, w1, b1, w2, b2, w3, b3, w4, b4)

    return uk[:B], uc[:B], rl[:B]


def _reference(H, e, w1, b1, w2, b2, w3, b3, w4, b4):
    """Pure-JAX mirror of the torch forward for correctness checking."""
    z = jnp.maximum(jnp.einsum('bskd,dh->bskh', H, w1) + b1, 0.0)
    ukf = jnp.einsum('bskh,hc->bskc', z, w2) + b2
    uk = jnp.mean(ukf, axis=1)                                          # (B, K, ch)
    denom = jnp.maximum(jnp.sum(jnp.abs(e), axis=2, keepdims=True), 1e-12)
    eh = e / denom                                                      # F.normalize(p=1, dim=2)
    rl = jnp.einsum('blk,bkc->blc', eh, uk)
    z2 = jnp.maximum(jnp.einsum('blc,cd->bld', rl, w3) + b3, 0.0)
    rl = jnp.einsum('bld,dc->blc', z2, w4) + b4
    uc = jnp.mean(uk, axis=1)                                           # (B, ch)
    return uk, uc, rl


if __name__ == "__main__":
    # Small shapes consistent with the module: in_dim = 2*M*(N+1).
    M, N = 4, 4
    in_dim = 2 * M * (N + 1)          # 40
    ch = 32
    h2dim = 2 * ch
    B, S, K, L = 16, 4, 6, 8          # batch, sample axis, users, RL nodes

    key = jax.random.PRNGKey(0)
    kh, ke, k1, k2, k3, k4, k5, k6, k7, k8 = jax.random.split(key, 10)

    H = jax.random.normal(kh, (B, S, K, in_dim), jnp.float32)
    e = jax.random.uniform(ke, (B, L, K), jnp.float32, minval=0.1, maxval=1.0)

    w1 = jax.random.normal(k1, (in_dim, h2dim), jnp.float32) / jnp.sqrt(in_dim)
    b1 = jax.random.normal(k2, (1, h2dim), jnp.float32) * 0.01
    w2 = jax.random.normal(k3, (h2dim, ch), jnp.float32) / jnp.sqrt(h2dim)
    b2 = jax.random.normal(k4, (1, ch), jnp.float32) * 0.01
    w3 = jax.random.normal(k5, (ch, ch), jnp.float32) / jnp.sqrt(ch)
    b3 = jax.random.normal(k6, (1, ch), jnp.float32) * 0.01
    w4 = jax.random.normal(k7, (ch, ch), jnp.float32) / jnp.sqrt(ch)
    b4 = jax.random.normal(k8, (1, ch), jnp.float32) * 0.01

    # block_b=8 -> grid of 2 steps, exercising the batch-blocked pipeline.
    uk, uc, rl = initial_layer_forward(H, e, w1, b1, w2, b2, w3, b3, w4, b4,
                                       block_b=8)
    uk, uc, rl = jax.block_until_ready((uk, uc, rl))

    uk_r, uc_r, rl_r = _reference(H, e, w1, b1, w2, b2, w3, b3, w4, b4)
    assert uk.shape == (B, K, ch) and uc.shape == (B, ch) and rl.shape == (B, L, ch)
    assert jnp.allclose(uk, uk_r, atol=1e-4, rtol=1e-4)
    assert jnp.allclose(uc, uc_r, atol=1e-4, rtol=1e-4)
    assert jnp.allclose(rl, rl_r, atol=1e-4, rtol=1e-4)
    print("KERNEL_OK")
</pallas_src>

<mosaic_0001>
module attributes {stable_mosaic.version = 11 : i64} {
  func.func @_initial_layer_kernel(%arg0: i32, %arg1: memref<8x24x40xf32, #tpu.memory_space<vmem>>, %arg2: memref<8x8x6xf32, #tpu.memory_space<vmem>>, %arg3: memref<40x64xf32, #tpu.memory_space<vmem>>, %arg4: memref<1x64xf32, #tpu.memory_space<vmem>>, %arg5: memref<64x32xf32, #tpu.memory_space<vmem>>, %arg6: memref<1x32xf32, #tpu.memory_space<vmem>>, %arg7: memref<32x32xf32, #tpu.memory_space<vmem>>, %arg8: memref<1x32xf32, #tpu.memory_space<vmem>>, %arg9: memref<32x32xf32, #tpu.memory_space<vmem>>, %arg10: memref<1x32xf32, #tpu.memory_space<vmem>>, %arg11: memref<8x6x32xf32, #tpu.memory_space<vmem>>, %arg12: memref<8x32xf32, #tpu.memory_space<vmem>>, %arg13: memref<8x8x32xf32, #tpu.memory_space<vmem>>) attributes {dimension_semantics = [#tpu.dimension_semantics<parallel>], iteration_bounds = array<i64: 2>, scalar_prefetch = 0 : i64, scratch_operands = 0 : i64, tpu.core_type = #tpu.core_type<tc>, window_params = [{transform_indices = @transform_0, window_bounds = array<i64: 8, 24, 40>}, {transform_indices = @transform_1, window_bounds = array<i64: 8, 8, 6>}, {pipeline_mode = #tpu.pipeline_mode<synchronous>, transform_indices = @transform_2, window_bounds = array<i64: 40, 64>}, {pipeline_mode = #tpu.pipeline_mode<synchronous>, transform_indices = @transform_3, window_bounds = array<i64: 1, 64>}, {pipeline_mode = #tpu.pipeline_mode<synchronous>, transform_indices = @transform_4, window_bounds = array<i64: 64, 32>}, {pipeline_mode = #tpu.pipeline_mode<synchronous>, transform_indices = @transform_5, window_bounds = array<i64: 1, 32>}, {pipeline_mode = #tpu.pipeline_mode<synchronous>, transform_indices = @transform_6, window_bounds = array<i64: 32, 32>}, {pipeline_mode = #tpu.pipeline_mode<synchronous>, transform_indices = @transform_7, window_bounds = array<i64: 1, 32>}, {pipeline_mode = #tpu.pipeline_mode<synchronous>, transform_indices = @transform_8, window_bounds = array<i64: 32, 32>}, {pipeline_mode = #tpu.pipeline_mode<synchronous>, transform_indices = @transform_9, window_bounds = array<i64: 1, 32>}, {transform_indices = @transform_10, window_bounds = array<i64: 8, 6, 32>}, {transform_indices = @transform_11, window_bounds = array<i64: 8, 32>}, {transform_indices = @transform_12, window_bounds = array<i64: 8, 8, 32>}]} {
    %c0 = arith.constant 0 : index
    %c0_0 = arith.constant 0 : index
    %c0_1 = arith.constant 0 : index
    %0 = vector.load %arg1[%c0, %c0_0, %c0_1] : memref<8x24x40xf32, #tpu.memory_space<vmem>>, vector<8x24x40xf32>
    %1 = vector.shape_cast %0 : vector<8x24x40xf32> to vector<192x40xf32>
    %c0_2 = arith.constant 0 : index
    %c0_3 = arith.constant 0 : index
    %2 = vector.load %arg3[%c0_2, %c0_3] : memref<40x64xf32, #tpu.memory_space<vmem>>, vector<40x64xf32>
    %cst = arith.constant dense<0.000000e+00> : vector<192x64xf32>
    %3 = tpu.matmul %1, %2, %cst {dimension_numbers = #tpu.dot_dimension_numbers<[1], [0], [0], [1], [0, 0, 1, 1], [], []>} : vector<192x40xf32>, vector<40x64xf32>, vector<192x64xf32> -> vector<192x64xf32>
    %c0_4 = arith.constant 0 : index
    %c0_5 = arith.constant 0 : index
    %4 = vector.load %arg4[%c0_4, %c0_5] : memref<1x64xf32, #tpu.memory_space<vmem>>, vector<1x64xf32>
    %5 = vector.broadcast %4 : vector<1x64xf32> to vector<192x64xf32>
    %6 = arith.addf %3, %5 : vector<192x64xf32>
    %cst_6 = arith.constant 0.000000e+00 : f32
    %7 = vector.broadcast %cst_6 : f32 to vector<192x64xf32>
    %8 = arith.maximumf %6, %7 : vector<192x64xf32>
    %9 = vector.shape_cast %8 : vector<192x64xf32> to vector<8x24x64xf32>
    %10 = vector.extract_strided_slice %9 {offsets = [0, 0, 0], sizes = [8, 6, 64], strides = [1, 1, 1]} : vector<8x24x64xf32> to vector<8x6x64xf32>
    %11 = vector.extract_strided_slice %9 {offsets = [0, 6, 0], sizes = [8, 6, 64], strides = [1, 1, 1]} : vector<8x24x64xf32> to vector<8x6x64xf32>
    %12 = arith.addf %10, %11 : vector<8x6x64xf32>
    %13 = vector.extract_strided_slice %9 {offsets = [0, 12, 0], sizes = [8, 6, 64], strides = [1, 1, 1]} : vector<8x24x64xf32> to vector<8x6x64xf32>
    %14 = arith.addf %12, %13 : vector<8x6x64xf32>
    %15 = vector.extract_strided_slice %9 {offsets = [0, 18, 0], sizes = [8, 6, 64], strides = [1, 1, 1]} : vector<8x24x64xf32> to vector<8x6x64xf32>
    %16 = arith.addf %14, %15 : vector<8x6x64xf32>
    %cst_7 = arith.constant 2.500000e-01 : f32
    %17 = vector.broadcast %cst_7 : f32 to vector<8x6x64xf32>
    %18 = arith.mulf %16, %17 : vector<8x6x64xf32>
    %19 = vector.shape_cast %18 : vector<8x6x64xf32> to vector<48x64xf32>
    %c0_8 = arith.constant 0 : index
    %c0_9 = arith.constant 0 : index
    %20 = vector.load %arg5[%c0_8, %c0_9] : memref<64x32xf32, #tpu.memory_space<vmem>>, vector<64x32xf32>
    %cst_10 = arith.constant dense<0.000000e+00> : vector<48x32xf32>
    %21 = tpu.matmul %19, %20, %cst_10 {dimension_numbers = #tpu.dot_dimension_numbers<[1], [0], [0], [1], [0, 0, 1, 1], [], []>} : vector<48x64xf32>, vector<64x32xf32>, vector<48x32xf32> -> vector<48x32xf32>
    %c0_11 = arith.constant 0 : index
    %c0_12 = arith.constant 0 : index
    %22 = vector.load %arg6[%c0_11, %c0_12] : memref<1x32xf32, #tpu.memory_space<vmem>>, vector<1x32xf32>
    %23 = vector.broadcast %22 : vector<1x32xf32> to vector<48x32xf32>
    %24 = arith.addf %21, %23 : vector<48x32xf32>
    %25 = vector.shape_cast %24 : vector<48x32xf32> to vector<8x6x32xf32>
    %c0_13 = arith.constant 0 : index
    %c0_14 = arith.constant 0 : index
    %c0_15 = arith.constant 0 : index
    %26 = vector.load %arg2[%c0_13, %c0_14, %c0_15] : memref<8x8x6xf32, #tpu.memory_space<vmem>>, vector<8x8x6xf32>
    %27 = math.absf %26 : vector<8x8x6xf32>
    %cst_16 = arith.constant dense<0.000000e+00> : vector<8x8xf32>
    %28 = vector.multi_reduction <add>, %27, %cst_16 [2] : vector<8x8x6xf32> to vector<8x8xf32>
    %29 = vector.shape_cast %28 : vector<8x8xf32> to vector<8x8x1xf32>
    %cst_17 = arith.constant 9.99999996E-13 : f32
    %30 = vector.broadcast %cst_17 : f32 to vector<8x8x1xf32>
    %31 = arith.maximumf %29, %30 : vector<8x8x1xf32>
    %32 = vector.broadcast %31 : vector<8x8x1xf32> to vector<8x8x6xf32>
    %33 = arith.divf %26, %32 : vector<8x8x6xf32>
    %34 = vector.extract_strided_slice %33 {offsets = [0, 0, 0], sizes = [8, 8, 1], strides = [1, 1, 1]} : vector<8x8x6xf32> to vector<8x8x1xf32>
    %35 = vector.extract_strided_slice %25 {offsets = [0, 0, 0], sizes = [8, 1, 32], strides = [1, 1, 1]} : vector<8x6x32xf32> to vector<8x1x32xf32>
    %36 = vector.broadcast %34 : vector<8x8x1xf32> to vector<8x8x32xf32>
    %37 = vector.broadcast %35 : vector<8x1x32xf32> to vector<8x8x32xf32>
    %38 = arith.mulf %36, %37 : vector<8x8x32xf32>
    %39 = vector.extract_strided_slice %33 {offsets = [0, 0, 1], sizes = [8, 8, 1], strides = [1, 1, 1]} : vector<8x8x6xf32> to vector<8x8x1xf32>
    %40 = vector.extract_strided_slice %25 {offsets = [0, 1, 0], sizes = [8, 1, 32], strides = [1, 1, 1]} : vector<8x6x32xf32> to vector<8x1x32xf32>
    %41 = vector.broadcast %39 : vector<8x8x1xf32> to vector<8x8x32xf32>
    %42 = vector.broadcast %40 : vector<8x1x32xf32> to vector<8x8x32xf32>
    %43 = arith.mulf %41, %42 : vector<8x8x32xf32>
    %44 = arith.addf %38, %43 : vector<8x8x32xf32>
    %45 = vector.extract_strided_slice %33 {offsets = [0, 0, 2], sizes = [8, 8, 1], strides = [1, 1, 1]} : vector<8x8x6xf32> to vector<8x8x1xf32>
    %46 = vector.extract_strided_slice %25 {offsets = [0, 2, 0], sizes = [8, 1, 32], strides = [1, 1, 1]} : vector<8x6x32xf32> to vector<8x1x32xf32>
    %47 = vector.broadcast %45 : vector<8x8x1xf32> to vector<8x8x32xf32>
    %48 = vector.broadcast %46 : vector<8x1x32xf32> to vector<8x8x32xf32>
    %49 = arith.mulf %47, %48 : vector<8x8x32xf32>
    %50 = arith.addf %44, %49 : vector<8x8x32xf32>
    %51 = vector.extract_strided_slice %33 {offsets = [0, 0, 3], sizes = [8, 8, 1], strides = [1, 1, 1]} : vector<8x8x6xf32> to vector<8x8x1xf32>
    %52 = vector.extract_strided_slice %25 {offsets = [0, 3, 0], sizes = [8, 1, 32], strides = [1, 1, 1]} : vector<8x6x32xf32> to vector<8x1x32xf32>
    %53 = vector.broadcast %51 : vector<8x8x1xf32> to vector<8x8x32xf32>
    %54 = vector.broadcast %52 : vector<8x1x32xf32> to vector<8x8x32xf32>
    %55 = arith.mulf %53, %54 : vector<8x8x32xf32>
    %56 = arith.addf %50, %55 : vector<8x8x32xf32>
    %57 = vector.extract_strided_slice %33 {offsets = [0, 0, 4], sizes = [8, 8, 1], strides = [1, 1, 1]} : vector<8x8x6xf32> to vector<8x8x1xf32>
    %58 = vector.extract_strided_slice %25 {offsets = [0, 4, 0], sizes = [8, 1, 32], strides = [1, 1, 1]} : vector<8x6x32xf32> to vector<8x1x32xf32>
    %59 = vector.broadcast %57 : vector<8x8x1xf32> to vector<8x8x32xf32>
    %60 = vector.broadcast %58 : vector<8x1x32xf32> to vector<8x8x32xf32>
    %61 = arith.mulf %59, %60 : vector<8x8x32xf32>
    %62 = arith.addf %56, %61 : vector<8x8x32xf32>
    %63 = vector.extract_strided_slice %33 {offsets = [0, 0, 5], sizes = [8, 8, 1], strides = [1, 1, 1]} : vector<8x8x6xf32> to vector<8x8x1xf32>
    %64 = vector.extract_strided_slice %25 {offsets = [0, 5, 0], sizes = [8, 1, 32], strides = [1, 1, 1]} : vector<8x6x32xf32> to vector<8x1x32xf32>
    %65 = vector.broadcast %63 : vector<8x8x1xf32> to vector<8x8x32xf32>
    %66 = vector.broadcast %64 : vector<8x1x32xf32> to vector<8x8x32xf32>
    %67 = arith.mulf %65, %66 : vector<8x8x32xf32>
    %68 = arith.addf %62, %67 : vector<8x8x32xf32>
    %69 = vector.shape_cast %68 : vector<8x8x32xf32> to vector<64x32xf32>
    %c0_18 = arith.constant 0 : index
    %c0_19 = arith.constant 0 : index
    %70 = vector.load %arg7[%c0_18, %c0_19] : memref<32x32xf32, #tpu.memory_space<vmem>>, vector<32x32xf32>
    %cst_20 = arith.constant dense<0.000000e+00> : vector<64x32xf32>
    %71 = tpu.matmul %69, %70, %cst_20 {dimension_numbers = #tpu.dot_dimension_numbers<[1], [0], [0], [1], [0, 0, 1, 1], [], []>} : vector<64x32xf32>, vector<32x32xf32>, vector<64x32xf32> -> vector<64x32xf32>
    %c0_21 = arith.constant 0 : index
    %c0_22 = arith.constant 0 : index
    %72 = vector.load %arg8[%c0_21, %c0_22] : memref<1x32xf32, #tpu.memory_space<vmem>>, vector<1x32xf32>
    %73 = vector.broadcast %72 : vector<1x32xf32> to vector<64x32xf32>
    %74 = arith.addf %71, %73 : vector<64x32xf32>
    %cst_23 = arith.constant 0.000000e+00 : f32
    %75 = vector.broadcast %cst_23 : f32 to vector<64x32xf32>
    %76 = arith.maximumf %74, %75 : vector<64x32xf32>
    %c0_24 = arith.constant 0 : index
    %c0_25 = arith.constant 0 : index
    %77 = vector.load %arg9[%c0_24, %c0_25] : memref<32x32xf32, #tpu.memory_space<vmem>>, vector<32x32xf32>
    %cst_26 = arith.constant dense<0.000000e+00> : vector<64x32xf32>
    %78 = tpu.matmul %76, %77, %cst_26 {dimension_numbers = #tpu.dot_dimension_numbers<[1], [0], [0], [1], [0, 0, 1, 1], [], []>} : vector<64x32xf32>, vector<32x32xf32>, vector<64x32xf32> -> vector<64x32xf32>
    %c0_27 = arith.constant 0 : index
    %c0_28 = arith.constant 0 : index
    %79 = vector.load %arg10[%c0_27, %c0_28] : memref<1x32xf32, #tpu.memory_space<vmem>>, vector<1x32xf32>
    %80 = vector.broadcast %79 : vector<1x32xf32> to vector<64x32xf32>
    %81 = arith.addf %78, %80 : vector<64x32xf32>
    %c0_29 = arith.constant 0 : index
    %c0_30 = arith.constant 0 : index
    %c0_31 = arith.constant 0 : index
    %82 = vector.load %arg11[%c0_29, %c0_30, %c0_31] : memref<8x6x32xf32, #tpu.memory_space<vmem>>, vector<8x6x32xf32>
    tpu.vector_store %arg11[%c0_29, %c0_30, %c0_31], %25 {strides = array<i32>} : memref<8x6x32xf32, #tpu.memory_space<vmem>>, vector<8x6x32xf32>,
    %cst_32 = arith.constant dense<0.000000e+00> : vector<8x32xf32>
    %83 = vector.multi_reduction <add>, %25, %cst_32 [1] : vector<8x6x32xf32> to vector<8x32xf32>
    %cst_33 = arith.constant 6.000000e+00 : f32
    %84 = vector.broadcast %cst_33 : f32 to vector<8x32xf32>
    %85 = arith.divf %83, %84 : vector<8x32xf32>
    %c0_34 = arith.constant 0 : index
    %c0_35 = arith.constant 0 : index
    %86 = vector.load %arg12[%c0_34, %c0_35] : memref<8x32xf32, #tpu.memory_space<vmem>>, vector<8x32xf32>
    tpu.vector_store %arg12[%c0_34, %c0_35], %85 {strides = array<i32>} : memref<8x32xf32, #tpu.memory_space<vmem>>, vector<8x32xf32>,
    %87 = vector.shape_cast %81 : vector<64x32xf32> to vector<8x8x32xf32>
    %c0_36 = arith.constant 0 : index
    %c0_37 = arith.constant 0 : index
    %c0_38 = arith.constant 0 : index
    %88 = vector.load %arg13[%c0_36, %c0_37, %c0_38] : memref<8x8x32xf32, #tpu.memory_space<vmem>>, vector<8x8x32xf32>
    tpu.vector_store %arg13[%c0_36, %c0_37, %c0_38], %87 {strides = array<i32>} : memref<8x8x32xf32, #tpu.memory_space<vmem>>, vector<8x8x32xf32>,
    return
  }
  func.func @transform_0(%arg0: i32) -> (i32, i32, i32) {
    %c0_i32 = arith.constant 0 : i32
    %c0_i32_0 = arith.constant 0 : i32
    %c0_i32_1 = arith.constant 0 : i32
    return %arg0, %c0_i32, %c0_i32_0 : i32, i32, i32
  }
  func.func @transform_1(%arg0: i32) -> (i32, i32, i32) {
    %c0_i32 = arith.constant 0 : i32
    %c0_i32_0 = arith.constant 0 : i32
    %c0_i32_1 = arith.constant 0 : i32
    return %arg0, %c0_i32, %c0_i32_0 : i32, i32, i32
  }
  func.func @transform_2(%arg0: i32) -> (i32, i32) {
    %c0_i32 = arith.constant 0 : i32
    %c0_i32_0 = arith.constant 0 : i32
    %c0_i32_1 = arith.constant 0 : i32
    return %c0_i32, %c0_i32_0 : i32, i32
  }
  func.func @transform_3(%arg0: i32) -> (i32, i32) {
    %c0_i32 = arith.constant 0 : i32
    %c0_i32_0 = arith.constant 0 : i32
    %c0_i32_1 = arith.constant 0 : i32
    return %c0_i32, %c0_i32_0 : i32, i32
  }
  func.func @transform_4(%arg0: i32) -> (i32, i32) {
    %c0_i32 = arith.constant 0 : i32
    %c0_i32_0 = arith.constant 0 : i32
    %c0_i32_1 = arith.constant 0 : i32
    return %c0_i32, %c0_i32_0 : i32, i32
  }
  func.func @transform_5(%arg0: i32) -> (i32, i32) {
    %c0_i32 = arith.constant 0 : i32
    %c0_i32_0 = arith.constant 0 : i32
    %c0_i32_1 = arith.constant 0 : i32
    return %c0_i32, %c0_i32_0 : i32, i32
  }
  func.func @transform_6(%arg0: i32) -> (i32, i32) {
    %c0_i32 = arith.constant 0 : i32
    %c0_i32_0 = arith.constant 0 : i32
    %c0_i32_1 = arith.constant 0 : i32
    return %c0_i32, %c0_i32_0 : i32, i32
  }
  func.func @transform_7(%arg0: i32) -> (i32, i32) {
    %c0_i32 = arith.constant 0 : i32
    %c0_i32_0 = arith.constant 0 : i32
    %c0_i32_1 = arith.constant 0 : i32
    return %c0_i32, %c0_i32_0 : i32, i32
  }
  func.func @transform_8(%arg0: i32) -> (i32, i32) {
    %c0_i32 = arith.constant 0 : i32
    %c0_i32_0 = arith.constant 0 : i32
    %c0_i32_1 = arith.constant 0 : i32
    return %c0_i32, %c0_i32_0 : i32, i32
  }
  func.func @transform_9(%arg0: i32) -> (i32, i32) {
    %c0_i32 = arith.constant 0 : i32
    %c0_i32_0 = arith.constant 0 : i32
    %c0_i32_1 = arith.constant 0 : i32
    return %c0_i32, %c0_i32_0 : i32, i32
  }
  func.func @transform_10(%arg0: i32) -> (i32, i32, i32) {
    %c0_i32 = arith.constant 0 : i32
    %c0_i32_0 = arith.constant 0 : i32
    %c0_i32_1 = arith.constant 0 : i32
    return %arg0, %c0_i32, %c0_i32_0 : i32, i32, i32
  }
  func.func @transform_11(%arg0: i32) -> (i32, i32) {
    %c0_i32 = arith.constant 0 : i32
    %c0_i32_0 = arith.constant 0 : i32
    return %arg0, %c0_i32 : i32, i32
  }
  func.func @transform_12(%arg0: i32) -> (i32, i32, i32) {
    %c0_i32 = arith.constant 0 : i32
    %c0_i32_0 = arith.constant 0 : i32
    %c0_i32_1 = arith.constant 0 : i32
    return %arg0, %c0_i32, %c0_i32_0 : i32, i32, i32
  }
}

</mosaic_0001>

<bundles_post_ra>
// kernel: tpu_custom_call.1
= control target key start
LH: loop header
LB: loop body
LE: loop exit
PB: predicated region body
PF: predicated region fallthrough
CT: control target
= control target key end

     0   :  { %18 = vsyncpa [#allocation3], 0  ;;  %s4312_s0 = inlined_call_operand.hbm [shape: f32[16,24,40], index: 0, kind: input, shape index: {}]   ;;  %s4313_s1 = inlined_call_operand.vmem [shape: f32[16,8,6], index: 1, kind: input, shape index: {}]   ;;  %s4314_s2 = inlined_call_operand.vmem [shape: f32[40,64], index: 2, kind: input, shape index: {}]   ;;  %s4315_s3 = inlined_call_operand.vmem [shape: f32[1,64], index: 3, kind: input, shape index: {}]   ;;  %s4316_s4 = inlined_call_operand.vmem [shape: f32[64,32], index: 4, kind: input, shape index: {}]   ;;  %s4317_s5 = inlined_call_operand.vmem [shape: f32[1,32], index: 5, kind: input, shape index: {}]   ;;  %s4318_s6 = inlined_call_operand.vmem [shape: f32[32,32], index: 6, kind: input, shape index: {}]   ;;  %s4319_s7 = inlined_call_operand.vmem [shape: f32[1,32], index: 7, kind: input, shape index: {}]   ;;  %s4320_s8 = inlined_call_operand.vmem [shape: f32[32,32], index: 8, kind: input, shape index: {}]   ;;  %s4321_s9 = inlined_call_operand.vmem [shape: f32[1,32], index: 9, kind: input, shape index: {}]   ;;  %s4322_s10 = inlined_call_operand.vmem [shape: f32[16,6,32], index: 10, kind: output, shape index: {0}]   ;;  %s4323_s11 = inlined_call_operand.hbm [shape: f32[16,32], index: 11, kind: output, shape index: {1}]   ;;  %s4324_s12 = inlined_call_operand.hbm [shape: f32[16,8,32], index: 12, kind: output, shape index: {2}]  }
   0x1   :  { %20 = vsyncpa [#allocation3 + $0x1], 0 }
   0x2   :  { %21 = vsyncpa [#allocation4], 0 }
   0x3   :  { %23 = vsyncpa [#allocation4 + $0x1], 0 }
   0x4   :  { %24 = vsyncpa [#allocation7], 0 }
   0x5   :  { %26 = vsyncpa [#allocation7 + $0x1], 0  ;;  %s3310_s21 = smov 0   ;;  %s3312_s22 = smov 0  }
   0x6   :  { %s3314_s23 = smov 0   ;;  %s3316_s24 = smov 0  }
   0x7 LB: > { %4331 = sst [smem:[#allocation11_spill]] %s3217_s21  ;;  %s3331_s25 = sadd.s32 4294967295, %s3229_s24   ;;  %s3229_s24 = sphi %s3316_s24, %s4362_s24   ;;  %s3225_s23 = sphi %s3314_s23, %s4364_s23   ;;  %s3221_s22 = sphi %s3312_s22, %s4366_s22   ;;  %s3217_s21 = sphi %s3310_s21, %s4365_s21  }
   0x8   : > { %4332 = sst [smem:[#allocation12_spill]] %s3225_s23  ;;  %s2689_s26 = sadd.s32 4294967294, %s3229_s24  }
   0x9   : > { %s3335_s27 = sadd.s32 1, %s3229_s24   ;;  %s39_s28 = sadd.s32 1, %s3225_s23 }
   0xa   : > { %4333 = sst [smem:[#allocation13_spill]] %s3335_s27  ;;  %s36_s29 = ssub.s32 %s3229_s24, %s3335_s27 }
   0xb   : > { %p46_p0 = scmp.ne.s32.totalorder %s3225_s23, %s3221_s22  ;;  %p37_p1 = scmp.eq.s32.totalorder %s36_s29, 0 }
   0xc   : > { %p47_p2 = scmp.eq.s32.totalorder %s3229_s24, 0  ;;  %p52_p3 = scmp.ne.s32.totalorder %s3221_s22, %s3217_s21 }
   0xd   : > { %p53_p4 = scmp.eq.s32.totalorder %s3331_s25, 0  ;;  %p296_p7 = scmp.eq.s32.totalorder %s3331_s25, 1 }
   0xe   : > { %s3347_s30 = scalar_select %p37_p1, %s3225_s23, %s39_s28  }
   0xf   : > { %p48_p5 = por %p47_p2, %p46_p0  ;;  %p3349_p6 = por %p53_p4, %p52_p3 }
  0x10   : > { %4334 = sst [smem:[#allocation14_spill]] %s3347_s30  ;;  %p302_p8 = scmp.eq.s32.totalorder %s2689_s26, 1 }
  0x11   : > { %p2998_p10 = scmp.lt.s32.totalorder %s3229_s24, 2  ;;  %p3356_p11 = por %p296_p7, %p46_p0 }
  0x12   : > { %p3360_p12 = por %p302_p8, %p52_p3  ;;  %s372_s16 = sand.u32 1, %s3225_s23  }
  0x13   : > { %s4336_s14 = scalar_select %p3356_p11, 1, 0 }
  0x14   : > { %s4337_s15 = scalar_select %p3360_p12, 1, 0 }
  0x15   : > { %s2979_s17 = smul.u32 3072, %s3229_s24  ;;  %p3371_p13 = pnand %p2998_p10, %p48_p5 }
  0x16   : > { %4338 = sst [smem:[#allocation15_spill]] %s4337_s15  ;;  %s2978_s18 = smul.u32 192, %s372_s16 }
  0x17   : > { %s3369_s28 = scalar_lea.hbm %s4312_s0, %s2979_s17  ;;  %s3377_s23 = scalar_lea.sflag [#allocation3], %s372_s16 }
  0x18   : > { %s376_s29 = scalar_lea.vmem [#allocation2], %s2978_s18  ;;  %s3101_s27 = scalar_lea.hbm %s3369_s28, 3072 }
  0x19   : > { %s384_s30 = sshll.u32 %s376_s29, 4  ;;  %p3102_p0 = scmp.ne.s32.totalorder %s3369_s28, %s3101_s27  ;;  %s3375_s30 = int_to_ptr.vmem [resolvable:$true] %s384_s30 }
  0x1a   : > { %p3103_p1 = pneg %p3371_p13  ;;  %s3106_s20 = scalar_lea.hbm %s4312_s0, 6144 }
  0x1b   : > { %p3107_p4 = scmp.lt.u32.totalorder %s3369_s28, %s4312_s0  ;;  %p3108_p5 = scmp.lt.u32.totalorder %s3106_s20, %s3101_s27 }
  0x1c   : > { %p3104_p2 = pnand %p3103_p1, %p3102_p0  ;;  %p3110_p8 = scmp.lt.u32.totalorder %s3101_s27, %s3369_s28 }
  0x1d   : > { %p3109_p7 = por %p3108_p5, %p3107_p4 }
  0x1e   : > { %p3105_p3 = pneg %p3104_p2 }
  0x1f   : > { %p3111_p10 = por %p3110_p8, %p3109_p7 }
  0x21   : > { %p3112_p9 = pnand %p3111_p10, %p3105_p3 }
  0x23   : > { %3115 = shalt.err (!%p3112_p9)
}
  0x24   : > { %s3116_s16 = scalar_lea.vmem %s3375_s30, 3072  ;;  %s3231_s18 = smov [#allocation2]  }
  0x25   : > { %p3117_p0 = scmp.ne.s32.totalorder %s3375_s30, %s3116_s16  ;;  %s3121_s29 = sshll.u32 %s3231_s18, 4  ;;  %s3122_s29 = int_to_ptr.vmem [resolvable:$false] %s3121_s29 }
  0x26   : > { %s3123_s21 = scalar_lea.vmem %s3122_s29, 6144  ;;  %p3124_p11 = scmp.lt.s32.totalorder %s3375_s30, %s3122_s29 }
  0x27   : > { %p3119_p2 = pnand %p3117_p0, %p3103_p1  ;;  %p3125_p4 = scmp.lt.s32.totalorder %s3123_s21, %s3116_s16 }
  0x29   : > { %p3120_p12 = pneg %p3119_p2  ;;  %p3126_p5 = por %p3125_p4, %p3124_p11 }
  0x2b   : > { %p3127_p7 = pnand %p3126_p5, %p3120_p12 }
  0x2d   : > { %3130 = shalt.err (!%p3127_p7)
}
  0x2e   : > { %s3232_s27 = smov 128   ;;  %s3233_s15 = smov 8  }
  0x2f   : > { %2990 = dma.hbm_to_vmem [thread:$0]  (!%p3371_p13), %s3369_s28, 3072, %s3375_s30, %s3377_s23, %s3232_s27, %s3232_s27, %s3233_s15  }
  0x30   : > { %p2695_p9 = scmp.ge.s32.totalorder %s3229_s24, 1  ;;  %p401_p1 = scmp.lt.s32.totalorder %s3229_s24, 3 }
  0x32   : > { %p402_p3 = pnand %p2695_p9, %p401_p1 }
  0x34   : > { %405 = sbr.rel (%p402_p3) target bundleno = 1066 (0x42a), region = 60 }
  0x3b   : > { %s3408_s17 = sand.u32 1, %s3221_s22  }
  0x3c   : > { %s2980_s19 = smul.u32 192, %s3408_s17  ;;  %s408_s20 = scalar_lea.sflag [#allocation3], %s3408_s17 }
  0x3e   : > { %s3412_s16 = scalar_lea.vmem [#allocation2], %s2980_s19 }
  0x3f   : > { %3204 = dma.done.wait (%p3349_p6), %s408_s20, 3072  }
  0x40   : > { %3206 = vsyncadd (%p3349_p6), %s408_s20, 4294964224  ;;  %s2698_s23 = sshll.u32 %s3331_s25, 3  ;;  %v505_v0 = vld [vmem:[%s4314_s2] sm:$0xff]  ;;  %v506_v1 = vld [vmem:[%s4314_s2 + $0x8] sm:$0xff]  ;;  %vm1446_vm0 = vcmask 48128   ;;  %vm517_vm1 = vcmask 326656  }
  0x41   : > { %p469_p11 = scmp.lt.s32.totalorder %s2698_s23, 15  ;;  %v2938_v3 = vpack.c.bf16 %v506_v1, %v505_v0  ;;  %v507_v5 = vld [vmem:[%s4314_s2 + $0x10] sm:$0xff]  ;;  %v508_v6 = vld [vmem:[%s4314_s2 + $0x18] sm:$0xff]  ;;  %v481_v10 = vld [vmem:[%s3412_s16] sm:$0xff]  ;;  %v3234_v44 = vmov 1   ;;  %v3235_v47 = vmov 0  }
  0x42   : > { %v2942_v8 = vpack.c.bf16 %v508_v6, %v507_v5  ;;  %2837 = vmatprep.mubr.msk.f32.mxu0 %vm517_vm1, %v481_v10  ;;  %v509_v14 = vld [vmem:[%s4314_s2 + $0x20] sm:$0xff]  ;;  %v482_v19 = vld [vmem:[%s3412_s16 + $0x8] sm:$0xff]  ;;  %v483_v20 = vld [vmem:[%s3412_s16 + $0x10] sm:$0xff]  ;;  %3044 = vset.pattern.permute.xlu1 %v3234_v44  ;;  %vm815_vm2 = vcmask 1041408   ;;  %vm864_vm3 = vcmask 1043456   ;;  %vm1190_vm4 = vcmask 523264  }
  0x43   : > { %s4368_s23 = smov (!%p469_p11, %s2698_s23), 15  ;;  %2939 = vmatprep.subr.bf16.mxu0 %v2938_v3  ;;  %v484_v29 = vld [vmem:[%s3412_s16 + $0x18] sm:$0xff]  ;;  %v485_v33 = vld [vmem:[%s3412_s16 + $0x20] sm:$0xff]  ;;  %v486_v35 = vld [vmem:[%s3412_s16 + $0x28] sm:$0xff]  ;;  %3043 = vset.pattern.permute.xlu0 %v3235_v47  ;;  %vm2400_vm5 = vcmask 259072   ;;  %vm1986_vm6 = vcmask 261120  }
  0x44   : > { %s2699_s30 = sshll.u32 %s4368_s23, 3  ;;  %2941 = vmatpush3.bf16.msra.mxu0 %v2938_v3  ;;  %v487_v37 = vld [vmem:[%s3412_s16 + $0x30] sm:$0xff]  ;;  %v488_v38 = vld [vmem:[%s3412_s16 + $0x38] sm:$0xff]  ;;  %v489_v39 = vld [vmem:[%s3412_s16 + $0x40] sm:$0xff]  ;;  %vm2482_vm7 = vcmask 1041409   ;;  %vm2484_vm8 = vcmask 1042434  }
  0x45   : > { %s3427_s18 = scalar_lea.vmem %s4313_s1, %s2699_s30  ;;  %2943 = vmatprep.subr.bf16.mxu0 %v2942_v8  ;;  %v490_v40 = vld [vmem:[%s3412_s16 + $0x48] sm:$0xff]  ;;  %v491_v41 = vld [vmem:[%s3412_s16 + $0x50] sm:$0xff]  ;;  %v492_v42 = vld [vmem:[%s3412_s16 + $0x58] sm:$0xff]  ;;  %s3897_s21 = scalar_lea.vmem %s4322_s10, %s2699_s30  ;;  %vm2486_vm9 = vcmask 1043459   ;;  %vm2488_vm10 = vcmask 1044484   ;;  %vm2490_vm11 = vcmask 1045509  }
  0x46   : > { %v3436_v2 = vld [vmem:[%s3427_s18] sm:$0xff]  ;;  %v3446_v7 = vld [vmem:[%s3427_s18 + $0x8] sm:$0xff]  ;;  %v3454_v13 = vld [vmem:[%s3427_s18 + $0x10] sm:$0xff]  ;;  %vm2492_vm12 = vcmask 1046534   ;;  %s2696_s23 = sshll.u32 %s3408_s17, 3  ;;  %vm2494_vm13 = vcmask 1047559  }
  0x47   : > { %v1438_v4 = vand.u32 2147483647, %v3436_v2  ;;  %v1439_v9 = vand.u32 2147483647, %v3446_v7  ;;  %v1440_v15 = vand.u32 2147483647, %v3454_v13 }
  0x48   : > { %2945 = vmatpush3.bf16.msra.mxu0 %v2942_v8  ;;  %v3462_v17 = vld [vmem:[%s3427_s18 + $0x18] sm:$0xff]  ;;  %v3469_v22 = vld [vmem:[%s3427_s18 + $0x20] sm:$0xff]  ;;  %v3472_v23 = vld [vmem:[%s3427_s18 + $0x28] sm:$0xff]  ;;  %s4204_s30 = scalar_lea.vmem [#allocation5], %s2696_s23  ;;  %s2512_s23 = scalar_lea.sflag [#allocation4], %s3408_s17 }
  0x49   : > { %v1447_v11 = vsel %vm1446_vm0, %v1438_v4, 0.0  ;;  %v1450_v12 = vsel %vm1446_vm0, %v1439_v9, 0.0  ;;  %v1453_v16 = vsel %vm1446_vm0, %v1440_v15, 0.0  ;;  %2835 = vmatprep.subr.mxu0 %v509_v14  ;;  %v1441_v18 = vand.u32 2147483647, %v3462_v17  ;;  %v3475_v24 = vld [vmem:[%s3427_s18 + $0x30] sm:$0xff] }
  0x4a   : > { %1448 = vadd.xlane.f32.xlu0 %v1447_v11  ;;  %1454 = vadd.xlane.f32.xlu1 %v1453_v16  ;;  %v1442_v25 = vand.u32 2147483647, %v3469_v22  ;;  %v1443_v26 = vand.u32 2147483647, %v3472_v23  ;;  %v1444_v27 = vand.u32 2147483647, %v3475_v24 }
  0x4b   : > { %v1456_v21 = vsel %vm1446_vm0, %v1441_v18, 0.0  ;;  %v3482_v28 = vld [vmem:[%s3427_s18 + $0x38] sm:$0xff]  ;;  %v493_v43 = vld [vmem:[%s3412_s16 + $0x60] sm:$0xff]  ;;  %v494_v45 = vld [vmem:[%s3412_s16 + $0x68] sm:$0xff]  ;;  %p4357_p12 = scmp.ne.s32.totalorder %s4336_s14, 0  ;;  %s3241_s27 = smov [#allocation5]  }
  0x4c   : > { %2836 = vmatpush3.msra.mxu0 %v509_v14  ;;  %v1459_v30 = vsel %vm1446_vm0, %v1442_v25, 0.0  ;;  %v1462_v31 = vsel %vm1446_vm0, %v1443_v26, 0.0  ;;  %v1445_v32 = vand.u32 2147483647, %v3482_v28  ;;  %v1465_v34 = vsel %vm1446_vm0, %v1444_v27, 0.0  ;;  %v495_v46 = vld [vmem:[%s3412_s16 + $0x70] sm:$0xff] }
  0x4d   : > { %2838 = vmatmul.mubr.msk.f32.vlgmr.msra.gmra.mrb[0].mxu0 %vm517_vm1, %v482_v19  ;;  %v496_v48 = vld [vmem:[%s3412_s16 + $0x78] sm:$0xff]  ;;  %v497_v49 = vld [vmem:[%s3412_s16 + $0x80] sm:$0xff]  ;;  %v498_v50 = vld [vmem:[%s3412_s16 + $0x88] sm:$0xff]  ;;  %s3135_s15 = sshll.u32 %s3241_s27, 4  ;;  %s3136_s15 = int_to_ptr.vmem [resolvable:$false] %s3135_s15 }
  0x4e   : > { %1451 = vadd.xlane.f32.xlu0 %v1450_v12  ;;  %1457 = vadd.xlane.f32.xlu1 %v1456_v21  ;;  %v1468_v36 = vsel %vm1446_vm0, %v1445_v32, 0.0  ;;  %v499_v51 = vld [vmem:[%s3412_s16 + $0x90] sm:$0xff]  ;;  %v500_v52 = vld [vmem:[%s3412_s16 + $0x98] sm:$0xff]  ;;  %v501_v53 = vld [vmem:[%s3412_s16 + $0xa0] sm:$0xff]  ;;  %s3137_s19 = scalar_lea.vmem %s3136_s15, 256 }
  0x4f   : > { %2840 = vmatprep.mubr.msk.f32.mxu0 %vm517_vm1, %v483_v20  ;;  %v502_v54 = vld [vmem:[%s3412_s16 + $0xa8] sm:$0xff]  ;;  %v503_v55 = vld [vmem:[%s3412_s16 + $0xb0] sm:$0xff]  ;;  %v504_v56 = vld [vmem:[%s3412_s16 + $0xb8] sm:$0xff]  ;;  %s2754_s16 = sshll.u32 %s3331_s25, 7 }
  0x50   : > { %v1073_v57 = vld [vmem:[%s4316_s4] sm:$0xff]  ;;  %v1074_v58 = vld [vmem:[%s4316_s4 + $0x8] sm:$0xff]  ;;  %v1075_v60 = vld [vmem:[%s4316_s4 + $0x10] sm:$0xff]  ;;  %s4229_s18 = scalar_lea.hbm %s4323_s11, %s2754_s16 }
  0x51   : > { %2841 = vmatmul.mubr.msk.f32.gmra.mrb[2].mxu0 %vm517_vm1, %v484_v29  ;;  %v2946_v59 = vpack.c.bf16 %v1074_v58, %v1073_v57  ;;  %v1076_v61 = vld [vmem:[%s4316_s4 + $0x18] sm:$0xff]  ;;  %v1077_v63 = vld [vmem:[%s4316_s4 + $0x20] sm:$0xff]  ;;  %v1078_v0 = vld [vmem:[%s4316_s4 + $0x28] sm:$0xff]  ;;  %v3236_v29 = vmov 3  }
  0x52   : > { %1460 = vadd.xlane.f32.xlu0 %v1459_v30  ;;  %1463 = vadd.xlane.f32.xlu1 %v1462_v31  ;;  %v2950_v62 = vpack.c.bf16 %v1076_v61, %v1075_v60  ;;  %v2954_v1 = vpack.c.bf16 %v1078_v0, %v1077_v63  ;;  %v1079_v3 = vld [vmem:[%s4316_s4 + $0x30] sm:$0xff]  ;;  %v1080_v4 = vld [vmem:[%s4316_s4 + $0x38] sm:$0xff]  ;;  %v3237_v30 = vmov 2   ;;  %v949_v61 = vlaneseq }
  0x53   : > { %2843 = vmatprep.mubr.msk.f32.mxu0 %vm517_vm1, %v485_v33  ;;  %2947 = vmatprep.subr.bf16.mxu1 %v2946_v59  ;;  %v2958_v5 = vpack.c.bf16 %v1080_v4, %v1079_v3 }
  0x54   : > { %2949 = vmatpush3.bf16.msra.mxu1 %v2946_v59  ;;  %v3240_v59 = vmov 1983009808  }
  0x55   : > { %2844 = vmatmul.mubr.msk.f32.gmra.mrb[4].mxu0 %vm517_vm1, %v486_v35  ;;  %2951 = vmatprep.subr.bf16.mxu1 %v2950_v62  ;;  %v947_v60 = vunpack.c.l.s4 %v3240_v59 }
  0x56   : > { %1466 = vadd.xlane.f32.xlu0 %v1465_v34  ;;  %1469 = vadd.xlane.f32.xlu1 %v1468_v36 }
  0x57   : > { %2846 = vmatprep.mubr.msk.f32.mxu0 %vm517_vm1, %v487_v37 }
  0x58   : > { %2953 = vmatpush3.bf16.msra.mxu1 %v2950_v62 }
  0x59   : > { %2847 = vmatmul.mubr.msk.f32.gmra.mrb[6].mxu0 %vm517_vm1, %v488_v38  ;;  %2955 = vmatprep.subr.bf16.mxu1 %v2954_v1 }
  0x5a   : > { %2849 = vmatprep.mubr.msk.f32.mxu0 %vm517_vm1, %v489_v39 }
  0x5c   : > { %2957 = vmatpush3.bf16.msra.mxu1 %v2954_v1 }
  0x5d   : > { %2850 = vmatmul.mubr.msk.f32.gmra.mrb[8].mxu0 %vm517_vm1, %v490_v40  ;;  %2959 = vmatprep.subr.bf16.mxu1 %v2958_v5 }
  0x5e   : > { %2852 = vmatprep.mubr.msk.f32.mxu0 %vm517_vm1, %v491_v41 }
  0x60   : > { %2961 = vmatpush3.bf16.msra.mxu1 %v2958_v5 }
  0x61   : > { %2853 = vmatmul.mubr.msk.f32.gmra.mrb[10].mxu0 %vm517_vm1, %v492_v42  ;;  %v3239_v42 = vmov 4  }
  0x62   : > { %2855 = vmatprep.mubr.msk.f32.mxu0 %vm517_vm1, %v493_v43 }
  0x65   : > { %2856 = vmatmul.mubr.msk.f32.gmra.mrb[12].mxu0 %vm517_vm1, %v494_v45 }
  0x66   : > { %2858 = vmatprep.mubr.msk.f32.mxu0 %vm517_vm1, %v495_v46 }
  0x69   : > { %2859 = vmatmul.mubr.msk.f32.gmra.mrb[14].mxu0 %vm517_vm1, %v496_v48 }
  0x6a   : > { %2861 = vmatprep.mubr.msk.f32.mxu0 %vm517_vm1, %v497_v49 }
  0x6d   : > { %2862 = vmatmul.mubr.msk.f32.gmra.mrb[16].mxu0 %vm517_vm1, %v498_v50 }
  0x6e   : > { %2864 = vmatprep.mubr.msk.f32.mxu0 %vm517_vm1, %v499_v51 }
  0x71   : > { %2865 = vmatmul.mubr.msk.f32.gmra.mrb[18].mxu0 %vm517_vm1, %v500_v52 }
  0x72   : > { %2867 = vmatprep.mubr.msk.f32.mxu0 %vm517_vm1, %v501_v53 }
  0x75   : > { %2868 = vmatmul.mubr.msk.f32.gmra.mrb[20].mxu0 %vm517_vm1, %v502_v54 }
  0x76   : > { %2870 = vmatprep.mubr.msk.f32.mxu0 %vm517_vm1, %v503_v55 }
  0x79   : > { %2871 = vmatmul.mubr.msk.f32.gmra.mrb[22].mxu0 %vm517_vm1, %v504_v56 }
  0xd7   : > { %v1449_v6 = vpop.xlane.xlu0 %1448  ;;  %v1455_v11 = vpop.xlane.xlu1 %1454 }
  0xd8   : > { %v1471_v8 = vmax.f32 %v1449_v6, 1e-12  ;;  %v1473_v21 = vmax.f32 %v1455_v11, 1e-12  ;;  %v948_v11 = vunpack.c.0.s8 %v947_v60 }
  0xda   : > { %3085 = vrcp.f32 %v1471_v8 }
  0xdb   : > { %v1452_v9 = vpop.xlane.xlu0 %1451  ;;  %v1458_v12 = vpop.xlane.xlu1 %1457 }
  0xdc   : > { %v1472_v10 = vmax.f32 %v1452_v9, 1e-12  ;;  %v1474_v14 = vmax.f32 %v1458_v12, 1e-12  ;;  %v3652_v12 = vshrl.u32 %v949_v61, 7 }
  0xde   : > { %3087 = vrcp.f32 %v1472_v10 }
  0xdf   : > { %3089 = vrcp.f32 %v1474_v14  ;;  %v1461_v20 = vpop.xlane.xlu0 %1460  ;;  %v1464_v27 = vpop.xlane.xlu1 %1463 }
  0xe0   : > { %v1475_v25 = vmax.f32 %v1461_v20, 1e-12  ;;  %3091 = vrcp.f32 %v1473_v21 }
  0xe2   : > { %3093 = vrcp.f32 %v1475_v25 }
  0xe3   : > { %v1467_v34 = vpop.xlane.xlu0 %1466  ;;  %v1470_v37 = vpop.xlane.xlu1 %1469 }
  0xe4   : > { %v3086_v15 = vpop.eup %3085  ;;  %v1477_v36 = vmax.f32 %v1467_v34, 1e-12 }
  0xe5   : > { %v3559_v16 = vmul.f32 %v3086_v15, %v3436_v2 }
  0xe7   : > { %1576 = vperm.xlu1 %3044, %v3559_v16   ;;  %1497 = vperm.xlu0 %3043, %v3559_v16  }
  0xe8   : > { %v3088_v18 = vpop.eup %3087 }
  0xe9   : > { %v3564_v19 = vmul.f32 %v3088_v18, %v3446_v7  ;;  %v3090_v26 = vpop.eup %3089  ;;  %v1476_v7 = vmax.f32 %v1464_v27, 1e-12 }
  0xea   : > { %v3569_v2 = vmul.f32 %v3090_v26, %v3462_v17  ;;  %v3092_v17 = vpop.eup %3091 }
  0xeb   : > { %3045 = vset.pattern.permute.xlu1 %v3235_v47  ;;  %3095 = vrcp.f32 %v1476_v7  ;;  %v3582_v32 = vmul.f32 %v3092_v17, %v3454_v13  ;;  %v1478_v13 = vmax.f32 %v1470_v37, 1e-12 }
  0xec   : > { %1502 = vperm.xlu1 %3045, %v3564_v19   ;;  %1512 = vperm.xlu0 %3043, %v3569_v2   ;;  %v3094_v31 = vpop.eup %3093  ;;  %3097 = vrcp.f32 %v1477_v36 }
  0xed   : > { %v3585_v33 = vmul.f32 %v3094_v31, %v3469_v22  ;;  %3099 = vrcp.f32 %v1478_v13  ;;  %v3238_v22 = vmov 5  }
  0xf0   : > { %3046 = vset.pattern.permute.xlu1 %v3234_v44  ;;  %3052 = vset.pattern.permute.xlu0 %v3236_v29 }
  0xf1   : > { %1580 = vperm.xlu1 %3046, %v3564_v19   ;;  %1740 = vperm.xlu0 %3052, %v3564_v19  }
  0xf5   : > { %3047 = vset.pattern.permute.xlu1 %v3237_v30  ;;  %3055 = vset.pattern.permute.xlu0 %v3237_v30  ;;  %v3096_v35 = vpop.eup %3095 }
  0xf6   : > { %1656 = vperm.xlu1 %3047, %v3559_v16   ;;  %1668 = vperm.xlu0 %3055, %v3569_v2   ;;  %v3592_v38 = vmul.f32 %v3096_v35, %v3472_v23  ;;  %v3098_v23 = vpop.eup %3097 }
  0xf7   : > { %v3100_v39 = vpop.eup %3099  ;;  %v3607_v40 = vmul.f32 %v3098_v23, %v3475_v24  ;;  %v3630_v24 = vld [vmem:[%s4315_s3] ss:$0 sm:$0xff]  ;;  %v3661_v23 = vsub.s32 %v948_v11, %v3652_v12 }
  0xf8   : > { %v3614_v41 = vmul.f32 %v3100_v39, %v3482_v28 }
  0xfa   : > { %1660 = vperm.xlu1 %3047, %v3564_v19   ;;  %3057 = vset.pattern.permute.xlu0 %v3234_v44 }
  0xfb   : > { %1592 = vperm.xlu0 %3057, %v3585_v33  }
  0xfe   : > { %3048 = vset.pattern.permute.xlu1 %v3235_v47 }
  0xff   : > { %1507 = vperm.xlu1 %3048, %v3582_v32   ;;  %3060 = vset.pattern.permute.xlu0 %v3235_v47 }
 0x100   : > { %1522 = vperm.xlu0 %3060, %v3592_v38  }
 0x103   : > { %3049 = vset.pattern.permute.xlu1 %v3234_v44 }
 0x104   : > { %1584 = vperm.xlu1 %3049, %v3582_v32   ;;  %3063 = vset.pattern.permute.xlu0 %v3238_v22 }
 0x105   : > { %1900 = vperm.xlu0 %3063, %v3564_v19  }
 0x108   : > { %3050 = vset.pattern.permute.xlu1 %v3236_v29 }
 0x109   : > { %1736 = vperm.xlu1 %3050, %v3559_v16   ;;  %3066 = vset.pattern.permute.xlu0 %v3237_v30 }
 0x10a   : > { %1676 = vperm.xlu0 %3066, %v3592_v38  }
 0x10d   : > { %3051 = vset.pattern.permute.xlu1 %v3234_v44 }
 0x10e   : > { %1588 = vperm.xlu1 %3051, %v3569_v2   ;;  %3068 = vset.pattern.permute.xlu0 %v3234_v44 }
 0x10f   : > { %1600 = vperm.xlu0 %3068, %v3607_v40  }
 0x112   : > { %3053 = vset.pattern.permute.xlu1 %v3237_v30 }
 0x113   : > { %1664 = vperm.xlu1 %3053, %v3582_v32   ;;  %3071 = vset.pattern.permute.xlu0 %v3235_v47 }
 0x114   : > { %1532 = vperm.xlu0 %3071, %v3614_v41  }
 0x117   : > { %3054 = vset.pattern.permute.xlu1 %v3239_v42 }
 0x118   : > { %1816 = vperm.xlu1 %3054, %v3559_v16   ;;  %3074 = vset.pattern.permute.xlu0 %v3238_v22 }
 0x119   : > { %1908 = vperm.xlu0 %3074, %v3569_v2  }
 0x11c   : > { %1820 = vperm.xlu1 %3054, %v3564_v19  }
 0x11d   : > { %3077 = vset.pattern.permute.xlu0 %v3237_v30 }
 0x11e   : > { %1684 = vperm.xlu0 %3077, %v3614_v41  }
 0x120   : > { %3056 = vset.pattern.permute.xlu1 %v3235_v47  ;;  %v2839_v28 = vpop.f32.mrb[0].mxu0 }
 0x121   : > { %1517 = vperm.xlu1 %3056, %v3585_v33   ;;  %v662_v43 = vadd.f32 %v2839_v28, %v3630_v24  ;;  %v656_v45 = vpop.f32.mrb[1].mxu0 }
 0x122   : > { %3079 = vset.pattern.permute.xlu0 %v3238_v22  ;;  %v657_v46 = vadd.f32 %v3630_v24, %v656_v45 }
 0x123   : > { %1912 = vperm.xlu0 %3079, %v3585_v33   ;;  %v776_v48 = vmax.f32 %v662_v43, 0.0 }
 0x124   : > { %v775_v49 = vmax.f32 %v657_v46, 0.0  ;;  %v2842_v50 = vpop.f32.mrb[2].mxu0 }
 0x125   : > { %3058 = vset.pattern.permute.xlu1 %v3236_v29  ;;  %v817_v51 = vrot.slane %v776_v48, 6  ;;  %v666_v52 = vpop.f32.mrb[3].mxu0  ;;  %v672_v54 = vadd.f32 %v2842_v50, %v3630_v24  ;;  %v865_v1 = vrot.slane %v776_v48, 4 }
 0x126   : > { %1744 = vperm.xlu1 %3058, %v3582_v32   ;;  %v816_v53 = vrot.slane %v775_v49, 6  ;;  %v667_v55 = vadd.f32 %v3630_v24, %v666_v52 }
 0x127   : > { %3081 = vset.pattern.permute.xlu0 %v3239_v42  ;;  %v778_v3 = vmax.f32 %v672_v54, 0.0 }
 0x128   : > { %1840 = vperm.xlu0 %3081, %v3607_v40   ;;  %v818_v56 = vsel %vm815_vm2, %v816_v53, %v817_v51  ;;  %v777_v57 = vmax.f32 %v667_v55, 0.0  ;;  %v2845_v58 = vpop.f32.mrb[4].mxu0 }
 0x129   : > { %v848_v62 = vadd.f32 %v818_v56, %v775_v49  ;;  %v682_v63 = vadd.f32 %v2845_v58, %v3630_v24  ;;  %v676_v0 = vpop.f32.mrb[5].mxu0  ;;  %v819_v20 = vrot.slane %v778_v3, 6 }
 0x12a   : > { %3059 = vset.pattern.permute.xlu1 %v3238_v22  ;;  %v866_v4 = vrot.slane %v777_v57, 4  ;;  %v677_v5 = vadd.f32 %v3630_v24, %v676_v0  ;;  %v905_v15 = vrot.slane %v777_v57, 2 }
 0x12b   : > { %1896 = vperm.xlu1 %3059, %v3559_v16   ;;  %v780_v6 = vmax.f32 %v682_v63, 0.0 }
 0x12c   : > { %3084 = vset.pattern.permute.xlu0 %v3238_v22  ;;  %v867_v8 = vsel %vm864_vm3, %v865_v1, %v866_v4  ;;  %v779_v9 = vmax.f32 %v677_v5, 0.0  ;;  %v2848_v10 = vpop.f32.mrb[6].mxu0 }
 0x12d   : > { %1924 = vperm.xlu0 %3084, %v3614_v41   ;;  %v897_v14 = vadd.f32 %v867_v8, %v848_v62  ;;  %v869_v16 = vrot.slane %v780_v6, 4  ;;  %v692_v18 = vadd.f32 %v2848_v10, %v3630_v24  ;;  %v686_v19 = vpop.f32.mrb[7].mxu0  ;;  %v906_v46 = vrot.slane %v780_v6, 2 }
 0x12e   : > { %v820_v21 = vrot.slane %v779_v9, 6  ;;  %v868_v25 = vrot.slane %v779_v9, 4  ;;  %v687_v26 = vadd.f32 %v3630_v24, %v686_v19 }
 0x12f   : > { %3061 = vset.pattern.permute.xlu1 %v3234_v44  ;;  %v921_v27 = vadd.f32 %v905_v15, %v897_v14  ;;  %v782_v7 = vmax.f32 %v692_v18, 0.0 }
 0x130   : > { %1596 = vperm.xlu1 %3061, %v3592_v38   ;;  %v821_v17 = vsel %vm815_vm2, %v819_v20, %v820_v21  ;;  %v870_v31 = vsel %vm864_vm3, %v868_v25, %v869_v16  ;;  %v781_v34 = vmax.f32 %v687_v26, 0.0  ;;  %v2851_v35 = vpop.f32.mrb[8].mxu0 }
 0x131   : > { %v849_v36 = vadd.f32 %v821_v17, %v778_v3  ;;  %v823_v37 = vrot.slane %v782_v7, 6  ;;  %v696_v13 = vpop.f32.mrb[9].mxu0  ;;  %v929_v39 = vmul.f32 0.25, %v921_v27  ;;  %v702_v43 = vadd.f32 %v2851_v35, %v3630_v24 }
 0x132   : > { %v822_v28 = vrot.slane %v781_v34, 6  ;;  %v697_v45 = vadd.f32 %v3630_v24, %v696_v13  ;;  %v871_v57 = vrot.slane %v782_v7, 4 }
 0x133   : > { %v898_v48 = vadd.f32 %v870_v31, %v849_v36  ;;  %v784_v50 = vmax.f32 %v702_v43, 0.0  ;;  %v952_v60 = vrot.slane %v929_v39, %v3661_v23  ;;  %v945_v61 = vcombine.high %v929_v39, %v929_v39 }
 0x134   : > { %3062 = vset.pattern.permute.xlu1 %v3236_v29  ;;  %v824_v49 = vsel %vm815_vm2, %v822_v28, %v823_v37  ;;  %v783_v51 = vmax.f32 %v697_v45, 0.0  ;;  %v2854_v52 = vpop.f32.mrb[10].mxu0 }
 0x135   : > { %1748 = vperm.xlu1 %3062, %v3569_v2   ;;  %v850_v53 = vadd.f32 %v824_v49, %v781_v34  ;;  %v712_v54 = vadd.f32 %v2854_v52, %v3630_v24  ;;  %v706_v55 = vpop.f32.mrb[11].mxu0  ;;  %v922_v56 = vadd.f32 %v906_v46, %v898_v48  ;;  %v825_v0 = vrot.slane %v784_v50, 6 }
 0x136   : > { %v872_v58 = vrot.slane %v783_v51, 4  ;;  %v707_v59 = vadd.f32 %v3630_v24, %v706_v55  ;;  %v907_v6 = vrot.slane %v783_v51, 2  ;;  %v960_v16 = vcombine.high %v952_v60, %v952_v60 }
 0x137   : > { %v786_v62 = vmax.f32 %v712_v54, 0.0  ;;  %v930_v63 = vmul.f32 0.25, %v922_v56  ;;  %v959_v20 = vrot.slane %v945_v61, %v3661_v23 }
 0x138   : > { %v873_v1 = vsel %vm864_vm3, %v871_v57, %v872_v58  ;;  %v785_v3 = vmax.f32 %v707_v59, 0.0  ;;  %v2857_v4 = vpop.f32.mrb[12].mxu0  ;;  %v1088_v43 = vcombine.low %v952_v60, %v960_v16 }
 0x139   : > { %3064 = vset.pattern.permute.xlu1 %v3237_v30  ;;  %v899_v5 = vadd.f32 %v873_v1, %v850_v53  ;;  %v875_v8 = vrot.slane %v786_v62, 4  ;;  %v722_v9 = vadd.f32 %v2857_v4, %v3630_v24  ;;  %v716_v10 = vpop.f32.mrb[13].mxu0  ;;  %v968_v21 = vrot.slane %v930_v63, %v3661_v23 }
 0x13a   : > { %1672 = vperm.xlu1 %3064, %v3585_v33   ;;  %v826_v11 = vrot.slane %v785_v3, 6  ;;  %v874_v14 = vrot.slane %v785_v3, 4  ;;  %v717_v15 = vadd.f32 %v3630_v24, %v716_v10  ;;  %v961_v17 = vcombine.high %v930_v63, %v930_v63 }
 0x13b   : > { %v923_v18 = vadd.f32 %v907_v6, %v899_v5  ;;  %v788_v19 = vmax.f32 %v722_v9, 0.0  ;;  %v908_v34 = vrot.slane %v786_v62, 2  ;;  %v1089_v49 = vcombine.low %v959_v20, %v968_v21 }
 0x13c   : > { %v827_v25 = vsel %vm815_vm2, %v825_v0, %v826_v11  ;;  %v876_v26 = vsel %vm864_vm3, %v874_v14, %v875_v8  ;;  %v787_v27 = vmax.f32 %v717_v15, 0.0  ;;  %v2860_v7 = vpop.f32.mrb[14].mxu0  ;;  %v976_v61 = vcombine.high %v968_v21, %v968_v21 }
 0x13d   : > { %v931_v31 = vmul.f32 0.25, %v923_v18  ;;  %v851_v35 = vadd.f32 %v827_v25, %v784_v50  ;;  %v829_v36 = vrot.slane %v788_v19, 6  ;;  %v726_v37 = vpop.f32.mrb[15].mxu0  ;;  %v732_v39 = vadd.f32 %v2860_v7, %v3630_v24 }
 0x13e   : > { %3065 = vset.pattern.permute.xlu1 %v3239_v42  ;;  %v828_v13 = vrot.slane %v787_v27, 6  ;;  %v727_v28 = vadd.f32 %v3630_v24, %v726_v37  ;;  %v975_v50 = vrot.slane %v961_v17, %v3661_v23  ;;  %v877_v58 = vrot.slane %v788_v19, 4 }
 0x13f   : > { %1824 = vperm.xlu1 %3065, %v3582_v32   ;;  %v977_v45 = vcombine.high %v931_v31, %v931_v31  ;;  %v984_v46 = vrot.slane %v931_v31, %v3661_v23  ;;  %v900_v48 = vadd.f32 %v876_v26, %v851_v35  ;;  %v790_v56 = vmax.f32 %v732_v39, 0.0 }
 0x140   : > { %v830_v51 = vsel %vm815_vm2, %v828_v13, %v829_v36  ;;  %v789_v52 = vmax.f32 %v727_v28, 0.0  ;;  %v2863_v53 = vpop.f32.mrb[16].mxu0  ;;  %v1096_v0 = vrot.slane %v1088_v43, %v3661_v23  ;;  %v1103_v1 = vrot.slane %v1089_v49, %v3661_v23 }
 0x141   : > { %v924_v54 = vadd.f32 %v908_v34, %v900_v48  ;;  %v852_v55 = vadd.f32 %v830_v51, %v787_v27  ;;  %v736_v57 = vpop.f32.mrb[17].mxu0  ;;  %v742_v60 = vadd.f32 %v2863_v53, %v3630_v24  ;;  %v3690_v62 = vrot.slane %v977_v45, %v3661_v23 }
 0x142   : > { %v878_v59 = vrot.slane %v789_v52, 4  ;;  %v737_v63 = vadd.f32 %v3630_v24, %v736_v57  ;;  %v831_v8 = vrot.slane %v790_v56, 6  ;;  %v909_v10 = vrot.slane %v789_v52, 2 }
 0x143   : > { %1828 = vperm.xlu1 %3065, %v3569_v2   ;;  %v992_v2 = vcombine.high %v984_v46, %v984_v46  ;;  %v932_v4 = vmul.f32 0.25, %v924_v54  ;;  %v792_v5 = vmax.f32 %v742_v60, 0.0  ;;  %v1104_v16 = vcombine.low %v1096_v0, %v1103_v1 }
 0x144   : > { %v2866_v6 = vpop.f32.mrb[18].mxu0  ;;  %v791_v11 = vmax.f32 %v737_v63, 0.0  ;;  %v1105_v19 = vcombine.low %v976_v61, %v975_v50 }
 0x145   : > { %v1106_v3 = vcombine.low %v984_v46, %v992_v2  ;;  %v746_v14 = vpop.f32.mrb[19].mxu0  ;;  %v881_v15 = vrot.slane %v792_v5, 4  ;;  %v752_v18 = vadd.f32 %v2866_v6, %v3630_v24  ;;  %v993_v27 = vcombine.high %v932_v4, %v932_v4  ;;  %2889 = vmatprep.mubr.msk.f32.mxu1 %vm1190_vm4, %v1104_v16 }
 0x146   : > { %v832_v21 = vrot.slane %v791_v11, 6  ;;  %v880_v25 = vrot.slane %v791_v11, 4  ;;  %v747_v26 = vadd.f32 %v3630_v24, %v746_v14  ;;  %v1000_v7 = vrot.slane %v932_v4, %v3661_v23 }
 0x147   : > { %3067 = vset.pattern.permute.xlu1 %v3235_v47  ;;  %v879_v47 = vsel %vm864_vm3, %v877_v58, %v878_v59  ;;  %v794_v17 = vmax.f32 %v752_v18, 0.0  ;;  %v1120_v34 = vrot.slane %v1106_v3, %v3661_v23  ;;  %v910_v28 = vrot.slane %v792_v5, 2 }
 0x148   : > { %1527 = vperm.xlu1 %3067, %v3607_v40   ;;  %v901_v9 = vadd.f32 %v879_v47, %v852_v55  ;;  %v2869_v31 = vpop.f32.mrb[20].mxu0  ;;  %v833_v36 = vsel %vm815_vm2, %v831_v8, %v832_v21  ;;  %v882_v37 = vsel %vm864_vm3, %v880_v25, %v881_v15  ;;  %v793_v13 = vmax.f32 %v747_v26, 0.0 }
 0x149   : > { %v756_v39 = vpop.f32.mrb[21].mxu0  ;;  %v853_v43 = vadd.f32 %v833_v36, %v790_v56  ;;  %v835_v45 = vrot.slane %v794_v17, 6  ;;  %v1113_v46 = vrot.slane %v1105_v19, %v3661_v23  ;;  %v762_v51 = vadd.f32 %v2869_v31, %v3630_v24 }
 0x14a   : > { %v925_v20 = vadd.f32 %v909_v10, %v901_v9  ;;  %v834_v49 = vrot.slane %v793_v13, 6  ;;  %v757_v52 = vadd.f32 %v3630_v24, %v756_v39  ;;  %v1007_v54 = vrot.slane %v993_v27, %v3661_v23 }
 0x14b   : > { %v902_v53 = vadd.f32 %v882_v37, %v853_v43  ;;  %v1121_v50 = vcombine.low %v1113_v46, %v1120_v34  ;;  %v1008_v55 = vcombine.high %v1000_v7, %v1000_v7  ;;  %v883_v63 = vrot.slane %v794_v17, 4 }
 0x14c   : > { %3069 = vset.pattern.permute.xlu1 %v3236_v29  ;;  %v933_v35 = vmul.f32 0.25, %v925_v20  ;;  %v2872_v2 = vpop.f32.mrb[22].mxu0  ;;  %v836_v58 = vsel %vm815_vm2, %v834_v49, %v835_v45  ;;  %v795_v59 = vmax.f32 %v757_v52, 0.0  ;;  %v796_v4 = vmax.f32 %v762_v51, 0.0 }
 0x14d   : > { %1752 = vperm.xlu1 %3069, %v3585_v33   ;;  %v766_v60 = vpop.f32.mrb[23].mxu0  ;;  %v926_v61 = vadd.f32 %v910_v28, %v902_v53  ;;  %v854_v0 = vadd.f32 %v836_v58, %v793_v13  ;;  %2890 = vmatmul.mubr.msk.f32.vlgmr.msra.gmra.mrb[0].mxu1 %vm1190_vm4, %v1121_v50  ;;  %v772_v1 = vadd.f32 %v2872_v2, %v3630_v24 }
 0x14e   : > { %v1016_v48 = vrot.slane %v933_v35, %v3661_v23  ;;  %v1009_v56 = vcombine.high %v933_v35, %v933_v35  ;;  %v767_v47 = vadd.f32 %v3630_v24, %v766_v60  ;;  %v1122_v8 = vcombine.low %v3690_v62, %v1000_v7 }
 0x14f   : > { %v934_v5 = vmul.f32 0.25, %v926_v61  ;;  %v798_v6 = vmax.f32 %v772_v1, 0.0  ;;  %v1123_v9 = vcombine.low %v1008_v55, %v1007_v54  ;;  %v911_v14 = vrot.slane %v795_v59, 2 }
 0x150   : > { %v1024_v57 = vcombine.high %v1016_v48, %v1016_v48  ;;  %v1023_v10 = vrot.slane %v1009_v56, %v3661_v23  ;;  %v797_v15 = vmax.f32 %v767_v47, 0.0  ;;  %v837_v20 = vrot.slane %v796_v4, 6 }
 0x151   : > { %3070 = vset.pattern.permute.xlu1 %v3238_v22  ;;  %v1025_v16 = vcombine.high %v934_v5, %v934_v5  ;;  %v1032_v18 = vrot.slane %v934_v5, %v3661_v23  ;;  %v887_v24 = vrot.slane %v798_v6, 4  ;;  %v1137_v27 = vrot.slane %v1123_v9, %v3661_v23 }
 0x152   : > { %1904 = vperm.xlu1 %3070, %v3582_v32   ;;  %v1139_v3 = vcombine.low %v1016_v48, %v1024_v57  ;;  %v884_v32 = vrot.slane %v795_v59, 4  ;;  %v838_v21 = vrot.slane %v797_v15, 6  ;;  %v886_v25 = vrot.slane %v797_v15, 4  ;;  %v2124_v15 = vld [vmem:[%s4320_s8] sm:$0xff] }
 0x153   : > { %v1140_v7 = vcombine.low %v1023_v10, %v1032_v18  ;;  %v1039_v34 = vrot.slane %v1025_v16, %v3661_v23  ;;  %v1040_v35 = vcombine.high %v1032_v18, %v1032_v18  ;;  %v912_v43 = vrot.slane %v798_v6, 2  ;;  %v2125_v16 = vld [vmem:[%s4320_s8 + $0x8] sm:$0xff] }
 0x154   : > { %v885_v11 = vsel %vm864_vm3, %v883_v63, %v884_v32  ;;  %v1147_v62 = vrot.slane %v1139_v3, %v3661_v23  ;;  %v839_v17 = vsel %vm815_vm2, %v837_v20, %v838_v21  ;;  %v888_v31 = vsel %vm864_vm3, %v886_v25, %v887_v24 }
 0x155   : > { %v903_v19 = vadd.f32 %v885_v11, %v854_v0  ;;  %v855_v37 = vadd.f32 %v839_v17, %v796_v4  ;;  %v1154_v39 = vrot.slane %v1140_v7, %v3661_v23  ;;  %v1156_v48 = vcombine.low %v1040_v35, %v1039_v34  ;;  %v1975_v4 = vld [vmem:[%s4318_s6] sm:$0xff] }
 0x156   : > { %3072 = vset.pattern.permute.xlu1 %v3234_v44  ;;  %v1130_v44 = vrot.slane %v1122_v8, %v3661_v23  ;;  %v3791_v18 = vpack.c.bf16 %v2125_v16, %v2124_v15 }
 0x157   : > { %1604 = vperm.xlu1 %3072, %v3614_v41   ;;  %v927_v26 = vadd.f32 %v911_v14, %v903_v19  ;;  %v904_v45 = vadd.f32 %v888_v31, %v855_v37  ;;  %v1155_v46 = vcombine.low %v1147_v62, %v1154_v39  ;;  %v1164_v2 = vrot.slane %v1156_v48, %v3661_v23 }
 0x158   : > { %v1138_v13 = vcombine.low %v1130_v44, %v1137_v27 }
 0x159   : > { %v935_v36 = vmul.f32 0.25, %v927_v26  ;;  %v928_v52 = vadd.f32 %v912_v43, %v904_v45  ;;  %v3830_v43 = vsub.s32 1, %v3652_v12 }
 0x15a   : > { %2892 = vmatprep.mubr.msk.f32.mxu1 %vm1190_vm4, %v1138_v13 }
 0x15b   : > { %3073 = vset.pattern.permute.xlu1 %v3236_v29  ;;  %v1048_v28 = vrot.slane %v935_v36, %v3661_v23  ;;  %v1041_v49 = vcombine.high %v935_v36, %v935_v36  ;;  %2893 = vmatmul.mubr.msk.f32.gmra.mrb[2].mxu1 %vm1190_vm4, %v1155_v46  ;;  %v936_v50 = vmul.f32 0.25, %v928_v52  ;;  %v3821_v36 = vld [vmem:[%s4317_s5] ss:$0 sm:$0xff] }
 0x15c   : > { %1756 = vperm.xlu1 %3073, %v3592_v38  }
 0x15d   : > { %v1056_v51 = vcombine.high %v1048_v28, %v1048_v28  ;;  %v1055_v54 = vrot.slane %v1041_v49, %v3661_v23  ;;  %v1057_v55 = vcombine.high %v936_v50, %v936_v50  ;;  %v1064_v56 = vrot.slane %v936_v50, %v3661_v23 }
 0x15f   : > { %v1157_v53 = vcombine.low %v1048_v28, %v1056_v51  ;;  %v1071_v59 = vrot.slane %v1057_v55, %v3661_v23  ;;  %v1072_v60 = vcombine.high %v1064_v56, %v1064_v56  ;;  %v3827_v28 = vsub.s32 0, %v3652_v12 }
 0x160   : > { %3075 = vset.pattern.permute.xlu1 %v3237_v30  ;;  %v1173_v30 = vcombine.low %v1055_v54, %v1064_v56 }
 0x161   : > { %1680 = vperm.xlu1 %3075, %v3607_v40   ;;  %v1171_v57 = vrot.slane %v1157_v53, %v3661_v23  ;;  %v1174_v61 = vcombine.low %v1072_v60, %v1071_v59 }
 0x162   : > { %v1181_v63 = vrot.slane %v1173_v30, %v3661_v23 }
 0x163   : > { %v1172_v58 = vcombine.low %v1164_v2, %v1171_v57  ;;  %v1188_v0 = vrot.slane %v1174_v61, %v3661_v23 }
 0x165   : > { %3076 = vset.pattern.permute.xlu1 %v3239_v42  ;;  %2895 = vmatprep.mubr.msk.f32.mxu1 %vm1190_vm4, %v1172_v58  ;;  %v1189_v1 = vcombine.low %v1181_v63, %v1188_v0 }
 0x166   : > { %1832 = vperm.xlu1 %3076, %v3585_v33   ;;  %v3757_v33 = vpop.permute.xlu1 %1576  ;;  %v1498_v62 = vpop.permute.xlu0 %1497 }
 0x167   : > { %2896 = vmatmul.mubr.msk.f32.gmra.mrb[4].mxu1 %vm1190_vm4, %v1189_v1 }
 0x16a   : > { %1836 = vperm.xlu1 %3076, %v3592_v38  }
 0x16b   : > { %v3759_v3 = vpop.permute.xlu1 %1502  ;;  %v3806_v44 = vpop.permute.xlu0 %1512 }
 0x16e   : > { %3078 = vset.pattern.permute.xlu1 %v3236_v29 }
 0x16f   : > { %1760 = vperm.xlu1 %3078, %v3607_v40  }
 0x170   : > { %v3761_v29 = vpop.permute.xlu1 %1580  ;;  %v1741_v7 = vpop.permute.xlu0 %1740 }
 0x173   : > { %1764 = vperm.xlu1 %3078, %v3614_v41  }
 0x175   : > { %v3812_v31 = vpop.permute.xlu0 %1668 }
 0x177   : > { %3080 = vset.pattern.permute.xlu1 %v3238_v22 }
 0x178   : > { %1916 = vperm.xlu1 %3080, %v3592_v38   ;;  %v1976_v38 = vld [vmem:[%s4318_s6 + $0x8] sm:$0xff] }
 0x17a   : > { %v3816_v35 = vpop.permute.xlu0 %1592 }
 0x17c   : > { %3082 = vset.pattern.permute.xlu1 %v3239_v42  ;;  %v3769_v42 = vpop.permute.xlu1 %1656 }
 0x17d   : > { %1844 = vperm.xlu1 %3082, %v3614_v41   ;;  %v2962_v41 = vpack.c.bf16 %v1976_v38, %v1975_v4 }
 0x17f   : > { %2963 = vmatprep.subr.bf16.mxu1 %v2962_v41  ;;  %v3834_v51 = vpop.permute.xlu0 %1522 }
 0x180   : > { %2965 = vmatpush3.bf16.msra.mxu1 %v2962_v41  ;;  %v1661_v47 = vpop.permute.xlu1 %1660 }
 0x181   : > { %3083 = vset.pattern.permute.xlu1 %v3238_v22  ;;  %v1977_v22 = vld [vmem:[%s4318_s6 + $0x10] sm:$0xff] }
 0x182   : > { %1920 = vperm.xlu1 %3083, %v3607_v40   ;;  %v1978_v40 = vld [vmem:[%s4318_s6 + $0x18] sm:$0xff] }
 0x183   : > { %v2966_v32 = vpack.c.bf16 %v1978_v40, %v1977_v22 }
 0x184   : > { %v1508_v5 = vpop.permute.xlu1 %1507  ;;  %v1901_v15 = vpop.permute.xlu0 %1900 }
 0x185   : > { %2967 = vmatprep.subr.bf16.mxu1 %v2966_v32 }
 0x186   : > { %2969 = vmatpush3.bf16.msra.mxu1 %v2966_v32 }
 0x187   : > { %2971 = vmatprep.subr.bf16.mxu1 %v3791_v18 }
 0x188   : > { %v1585_v6 = vpop.permute.xlu1 %1584 }
 0x18c   : > { %v3777_v8 = vpop.permute.xlu1 %1736 }
 0x190   : > { %v3779_v9 = vpop.permute.xlu1 %1588 }
 0x194   : > { %v3781_v10 = vpop.permute.xlu1 %1664 }
 0x198   : > { %v3783_v11 = vpop.permute.xlu1 %1816 }
 0x19c   : > { %v1821_v14 = vpop.permute.xlu1 %1820 }
 0x1a0   : > { %v3793_v19 = vpop.permute.xlu1 %1517 }
 0x1a5   : > { %v3796_v24 = vpop.permute.xlu1 %1744 }
 0x1aa   : > { %v3798_v20 = vpop.permute.xlu1 %1896 }
 0x1af   : > { %v3800_v21 = vpop.permute.xlu1 %1596 }
 0x1b0   : > { %4340 = vst [vmem:[#allocation16_spill] sm:$0xff] %v3800_v21 }
 0x1b4   : > { %v3802_v25 = vpop.permute.xlu1 %1748 }
 0x1b9   : > { %v3804_v26 = vpop.permute.xlu1 %1672 }
 0x1be   : > { %v3808_v27 = vpop.permute.xlu1 %1824 }
 0x1c2   : > { %v3810_v17 = vpop.permute.xlu1 %1828 }
 0x1c7   : > { %v3814_v34 = vpop.permute.xlu1 %1527 }
 0x1cc   : > { %v3823_v37 = vpop.permute.xlu1 %1752 }
 0x1d1   : > { %v3837_v50 = vpop.permute.xlu1 %1904 }
 0x1d6   : > { %v3857_v38 = vpop.permute.xlu1 %1604 }
 0x220   : > { %v2891_v13 = vpop.f32.mrb[0].mxu1 }
 0x221   : > { %v1275_v39 = vadd.f32 %v2891_v13, %v3821_v36  ;;  %v1269_v45 = vpop.f32.mrb[1].mxu1 }
 0x222   : > { %v1270_v46 = vadd.f32 %v3821_v36, %v1269_v45 }
 0x223   : > { %v1321_v48 = vcombine.high %v1275_v39, %v1275_v39  ;;  %v1328_v49 = vrot.slane %v1275_v39, %v3661_v23 }
 0x224   : > { %v1304_v52 = vcombine.high %v1270_v46, %v1270_v46  ;;  %v1311_v53 = vrot.slane %v1270_v46, %v3661_v23 }
 0x225   : > { %v1335_v2 = vrot.slane %v1321_v48, %v3661_v23  ;;  %v1336_v54 = vcombine.high %v1328_v49, %v1328_v49  ;;  %v1694_v55 = vrot.slane %v1328_v49, %v3827_v28  ;;  %v1774_v12 = vrot.slane %v1328_v49, %v3830_v43 }
 0x226   : > { %v3843_v56 = vrot.slane %v1304_v52, %v3661_v23  ;;  %v3845_v57 = vcombine.high %v1311_v53, %v1311_v53  ;;  %v1538_v58 = vrot.slane %v1311_v53, %v3827_v28  ;;  %v1610_v61 = vrot.slane %v1311_v53, %v3830_v43 }
 0x227   : > { %v3848_v59 = vcombine.high %v1335_v2, %v1335_v2  ;;  %v1546_v60 = vrot.slane %v1335_v2, %v3827_v28  ;;  %v1618_v30 = vrot.slane %v1335_v2, %v3830_v43  ;;  %v1720_v63 = vmul.f32 %v1694_v55, %v1661_v47 }
 0x228   : > { %v3853_v0 = vmul.f32 %v1774_v12, %v1741_v7  ;;  %v1854_v1 = vrot.slane %v1336_v54, %v3827_v28  ;;  %v1934_v4 = vrot.slane %v1336_v54, %v3830_v43  ;;  %v2294_v32 = vrot.slane %v1336_v54, %v3661_v23 }
 0x229   : > { %v3859_v41 = vmul.f32 %v1546_v60, %v1508_v5  ;;  %v3861_v22 = vmul.f32 %v1618_v30, %v1585_v6  ;;  %v2296_v47 = vcombine.low %v1335_v2, %v3848_v59  ;;  %v1320_v7 = vcombine.high %v3843_v56, %v3843_v56 }
 0x22a   : > { %v3866_v16 = vmul.f32 %v1854_v1, %v1821_v14  ;;  %v1567_v13 = vmul.f32 %v1538_v58, %v1498_v62  ;;  %v3871_v39 = vmul.f32 %v1934_v4, %v1901_v15  ;;  %v1639_v5 = vmul.f32 %v1610_v61, %v3757_v33 }
 0x22b   : > { %v1690_v6 = vrot.slane %v3845_v57, %v3827_v28  ;;  %v1542_v14 = vrot.slane %v1320_v7, %v3827_v28  ;;  %v1614_v46 = vrot.slane %v1320_v7, %v3830_v43  ;;  %v2264_v62 = vcombine.low %v1311_v53, %v3845_v57  ;;  %v3899_v53 = vpop.permute.xlu1 %1756 }
 0x22c   : > { %v3883_v2 = vadd.f32 %v1639_v5, %v1567_v13  ;;  %v2278_v33 = vrot.slane %v3843_v56, %v3661_v23  ;;  %v2280_v54 = vcombine.low %v1320_v7, %v1328_v49  ;;  %4341 = vst [vmem:[#allocation17_spill] sm:$0xff] %v3899_v53 }
 0x22d   : > { %v1568_v58 = vmul.f32 %v1542_v14, %v3759_v3  ;;  %v1640_v60 = vmul.f32 %v1614_v46, %v3761_v29  ;;  %v2271_v30 = vrot.slane %v2264_v62, %v3661_v23  ;;  %v2303_v29 = vrot.slane %v2296_v47, %v3661_v23 }
 0x22e   : > { %v2894_v52 = vpop.f32.mrb[2].mxu1  ;;  %v2287_v49 = vrot.slane %v2280_v54, %v3661_v23 }
 0x22f   : > { %v1285_v55 = vadd.f32 %v2894_v52, %v3821_v36  ;;  %v1279_v12 = vpop.f32.mrb[3].mxu1  ;;  %v1648_v4 = vadd.f32 %v1640_v60, %v1568_v58  ;;  %v2279_v15 = vcombine.low %v2271_v30, %v2278_v33 }
 0x230   : > { %v1280_v61 = vadd.f32 %v3821_v36, %v1279_v12  ;;  %v2295_v5 = vcombine.low %v2287_v49, %v2294_v32  ;;  %v1719_v49 = vmul.f32 %v1690_v6, %v3769_v42 }
 0x231   : > { %v1355_v1 = vcombine.high %v1285_v55, %v1285_v55  ;;  %v1362_v3 = vrot.slane %v1285_v55, %v3661_v23  ;;  %v3913_v52 = vadd.f32 %v1720_v63, %v1648_v4  ;;  %2401 = vst.msk [vmem:[%s3897_s21] sm:$0x3f] %vm2400_vm5, %v2279_v15  ;;  %v2409_v47 = vsel %vm2400_vm5, %v2279_v15, 0.0  ;;  %v3922_v55 = vpop.permute.xlu0 %1676 }
 0x232   : > { %v1338_v7 = vcombine.high %v1280_v61, %v1280_v61  ;;  %v3905_v13 = vrot.slane %v1280_v61, %v3661_v23  ;;  %2402 = vst.msk [vmem:[%s3897_s21 + $0x8] sm:$0x3f] %vm2400_vm5, %v2295_v5  ;;  %v2410_v32 = vrot.slane %v2409_v47, 4  ;;  %v2416_v12 = vsel %vm2400_vm5, %v2295_v5, 0.0 }
 0x233   : > { %v3908_v14 = vrot.slane %v1355_v1, %v3661_v23  ;;  %v3910_v46 = vcombine.high %v1362_v3, %v1362_v3  ;;  %v1554_v62 = vrot.slane %v1362_v3, %v3827_v28  ;;  %v1626_v33 = vrot.slane %v1362_v3, %v3830_v43  ;;  %v3936_v1 = vpop.permute.xlu1 %1680 }
 0x234   : > { %v3920_v54 = vrot.slane %v1338_v7, %v3661_v23  ;;  %v2417_v60 = vrot.slane %v2416_v12, 4  ;;  %4342 = vst [vmem:[#allocation18_spill] sm:$0xff] %v3936_v1  ;;  %v2411_v4 = vadd.f32 %v2410_v32, %v2409_v47  ;;  %v2310_v48 = vrot.slane %v3905_v13, %v3661_v23 }
 0x235   : > { %v3929_v63 = vcombine.high %v3908_v14, %v3908_v14  ;;  %v1571_v58 = vmul.f32 %v1554_v62, %v3793_v19  ;;  %v1643_v30 = vmul.f32 %v1626_v33, %v3816_v35  ;;  %v2328_v42 = vcombine.low %v1362_v3, %v3910_v46 }
 0x236   : > { %v2418_v5 = vadd.f32 %v2417_v60, %v2416_v12  ;;  %v2412_v6 = vrot.slane %v2411_v4, 2  ;;  %v2342_v47 = vrot.slane %v3908_v14, %v3661_v23  ;;  %v1353_v33 = vcombine.high %v3905_v13, %v3905_v13  ;;  %v3962_v60 = vpop.permute.xlu0 %1600 }
 0x237   : > { %v3944_v62 = vadd.f32 %v1643_v30, %v1571_v58  ;;  %v1702_v32 = vrot.slane %v3920_v54, %v3827_v28  ;;  %v2335_v12 = vrot.slane %v2328_v42, %v3661_v23  ;;  %v3958_v58 = vcombine.high %v3920_v54, %v3920_v54  ;;  %v3973_v45 = vpop.permute.xlu1 %1832 }
 0x238   : > { %v2419_v7 = vrot.slane %v2418_v5, 2  ;;  %v2413_v30 = vadd.f32 %v2412_v6, %v2411_v4  ;;  %v1550_v15 = vrot.slane %v1353_v33, %v3827_v28  ;;  %v1622_v35 = vrot.slane %v1353_v33, %v3830_v43 }
 0x239   : > { %v2343_v42 = vcombine.low %v2335_v12, %v2342_v47  ;;  %v3969_v40 = vmul.f32 %v1702_v32, %v3812_v31  ;;  %v2311_v32 = vcombine.low %v2303_v29, %v2310_v48  ;;  %v2326_v12 = vrot.slane %v3958_v58, %v3661_v23 }
 0x23a   : > { %v2420_v61 = vadd.f32 %v2419_v7, %v2418_v5  ;;  %v2897_v3 = vpop.f32.mrb[4].mxu1  ;;  %v2414_v4 = vrot.slane %v2413_v30, 1  ;;  %v3976_v6 = vmul.f32 %v1550_v15, %v3806_v44  ;;  %v2312_v7 = vcombine.low %v1353_v33, %v3920_v54 }
 0x23b   : > { %v3981_v5 = vpop.f32.mrb[5].mxu1  ;;  %2405 = vst.msk [vmem:[%s3897_s21 + $0x20] sm:$0x3f] %vm2400_vm5, %v2343_v42  ;;  %v2437_v47 = vsel %vm2400_vm5, %v2343_v42, 0.0  ;;  %v1727_v1 = vadd.f32 %v1719_v49, %v3883_v2  ;;  %v3993_v33 = vmul.f32 %v1622_v35, %v3779_v9  ;;  %2403 = vst.msk [vmem:[%s3897_s21 + $0x10] sm:$0x3f] %vm2400_vm5, %v2311_v32  ;;  %v4343_v48 = vrot.slane %v3845_v57, %v3830_v43  ;;  %v4011_v57 = vpop.permute.xlu1 %1836 }
 0x23c   : > { %v2421_v31 = vrot.slane %v2420_v61, 1  ;;  %v2415_v44 = vadd.f32 %v2414_v4, %v2413_v30  ;;  %v2438_v15 = vrot.slane %v2437_v47, 4  ;;  %v2319_v19 = vrot.slane %v2312_v7, %v3661_v23  ;;  %v1533_v30 = vpop.permute.xlu0 %1532 }
 0x23d   : > { %v2423_v42 = vsel %vm2400_vm5, %v2311_v32, 0.0  ;;  %v1799_v29 = vmul.f32 %v4343_v48, %v3777_v8  ;;  %v4344_v2 = vrot.slane %v3843_v56, %v3827_v28  ;;  %v1930_v49 = vrot.slane %v3843_v56, %v3830_v43 }
 0x23e   : > { %v3990_v53 = vadd.f32 %v2421_v31, %v2420_v61  ;;  %v2439_v4 = vadd.f32 %v2438_v15, %v2437_v47  ;;  %v2327_v7 = vcombine.low %v2319_v19, %v2326_v12  ;;  %v2424_v21 = vrot.slane %v2423_v42, 4 }
 0x23f   : > { %v1879_v9 = vmul.f32 %v4344_v2, %v3783_v11  ;;  %v1807_v61 = vadd.f32 %v1799_v29, %v1727_v1  ;;  %v1808_v35 = vadd.f32 %v3853_v0, %v3913_v52  ;;  %v1295_v31 = vadd.f32 %v2897_v3, %v3821_v36 }
 0x240   : > { %v4013_v8 = vmul.f32 0.16666667, %v2415_v44  ;;  %v2440_v19 = vrot.slane %v2439_v4, 2  ;;  %2404 = vst.msk [vmem:[%s3897_s21 + $0x18] sm:$0x3f] %vm2400_vm5, %v2327_v7  ;;  %v2425_v47 = vadd.f32 %v2424_v21, %v2423_v42  ;;  %v2430_v32 = vsel %vm2400_vm5, %v2327_v7, 0.0  ;;  %v1909_v42 = vpop.permute.xlu0 %1908 }
 0x241   : > { %v2431_v11 = vrot.slane %v2430_v32, 4  ;;  %v1887_v1 = vadd.f32 %v1879_v9, %v1807_v61  ;;  %v1959_v12 = vmul.f32 %v1930_v49, %v3798_v20  ;;  %v1888_v56 = vadd.f32 %v3866_v16, %v1808_v35 }
 0x242   : > { %v4020_v15 = vadd.f32 %v2440_v19, %v2439_v4  ;;  %v2426_v0 = vrot.slane %v2425_v47, 2  ;;  %v1389_v52 = vcombine.high %v1295_v31, %v1295_v31  ;;  %v4023_v3 = vrot.slane %v1295_v31, %v3661_v23 }
 0x243   : > { %v2432_v44 = vadd.f32 %v2431_v11, %v2430_v32  ;;  %v1967_v48 = vadd.f32 %v1959_v12, %v1887_v1  ;;  %v1968_v29 = vadd.f32 %v3871_v39, %v1888_v56  ;;  %v1649_v21 = vadd.f32 %v3861_v22, %v3859_v41  ;;  %v4043_v39 = vpop.permute.xlu1 %1760 }
 0x244   : > { %v2427_v7 = vadd.f32 %v2426_v0, %v2425_v47  ;;  %v4029_v20 = vrot.slane %v1389_v52, %v3661_v23  ;;  %v1404_v16 = vcombine.high %v4023_v3, %v4023_v3  ;;  %v4345_v4 = vrot.slane %v3848_v59, %v3827_v28  ;;  %v1685_v1 = vpop.permute.xlu0 %1684 }
 0x245   : > { %v2442_v9 = vrot.slane %v4020_v15, 1  ;;  %v2433_v61 = vrot.slane %v2432_v44, 2  ;;  %2906 = vmatprep.mubr.msk.f32.mxu1 %vm1986_vm6, %v1967_v48  ;;  %v1874_v41 = vrot.slane %v4023_v3, %v3827_v28  ;;  %v1954_v22 = vrot.slane %v4023_v3, %v3830_v43 }
 0x246   : > { %v1721_v2 = vmul.f32 %v4345_v4, %v3781_v10  ;;  %v2428_v49 = vrot.slane %v2427_v7, 1  ;;  %2907 = vmatmul.mubr.msk.f32.vlgmr.msra.gmra.mrb[6].mxu1 %vm1986_vm6, %v1968_v29  ;;  %v4048_v35 = vcombine.high %v4029_v20, %v4029_v20  ;;  %v1566_v10 = vrot.slane %v1404_v16, %v3827_v28 }
 0x247   : > { %v1638_v31 = vrot.slane %v1404_v16, %v3830_v43  ;;  %v2434_v19 = vadd.f32 %v2433_v61, %v2432_v44  ;;  %v1718_v47 = vrot.slane %v4029_v20, %v3827_v28  ;;  %v2374_v32 = vrot.slane %v4023_v3, %v3661_v23  ;;  %2973 = vmatpush3.bf16.msra.mxu1 %v3791_v18 }
 0x248   : > { %v2376_v11 = vcombine.low %v1404_v16, %v4029_v20  ;;  %v2429_v12 = vadd.f32 %v2428_v49, %v2427_v7  ;;  %v4058_v56 = vmul.f32 %v1566_v10, %v1533_v30  ;;  %v1798_v0 = vrot.slane %v4029_v20, %v3830_v43 }
 0x249   : > { %v2390_v52 = vrot.slane %v4048_v35, %v3661_v23  ;;  %v2435_v44 = vrot.slane %v2434_v19, 1  ;;  %v4065_v48 = vmul.f32 %v1638_v31, %v3857_v38  ;;  %v4067_v29 = vmul.f32 %v1718_v47, %v1685_v1 }
 0x24a   : > { %v2383_v16 = vrot.slane %v2376_v11, %v3661_v23  ;;  %v4070_v18 = vmul.f32 0.16666667, %v2429_v12  ;;  %v1729_v7 = vadd.f32 %v1721_v2, %v1649_v21  ;;  %v1778_v30 = vrot.slane %v3848_v59, %v3830_v43  ;;  %v4086_v2 = vpop.permute.xlu1 %1764 }
 0x24b   : > { %v4346_v4 = vrot.slane %v3905_v13, %v3827_v28  ;;  %v4347_v38 = vrot.slane %v3905_v13, %v3830_v43  ;;  %v1290_v31 = vadd.f32 %v3821_v36, %v3981_v5  ;;  %v1650_v21 = vadd.f32 %v3993_v33, %v3976_v6 }
 0x24c   : > { %v2391_v49 = vcombine.low %v2383_v16, %v2390_v52  ;;  %v4088_v59 = vadd.f32 %v2435_v44, %v2434_v19  ;;  %v1801_v47 = vmul.f32 %v1778_v30, %v3796_v24  ;;  %v1942_v11 = vrot.slane %v3958_v58, %v3830_v43 }
 0x24d   : > { %v1881_v61 = vmul.f32 %v4346_v4, %v3808_v27  ;;  %v1961_v10 = vmul.f32 %v4347_v38, %v3837_v50  ;;  %v1862_v27 = vrot.slane %v3958_v58, %v3827_v28  ;;  %v1372_v36 = vcombine.high %v1290_v31, %v1290_v31 }
 0x24e   : > { %2408 = vst.msk [vmem:[%s3897_s21 + $0x38] sm:$0x3f] %vm2400_vm5, %v2391_v49  ;;  %v4098_v50 = vsel %vm2400_vm5, %v2391_v49, 0.0  ;;  %v1379_v13 = vrot.slane %v1290_v31, %v3661_v23  ;;  %v1730_v6 = vadd.f32 %v3969_v40, %v1650_v21  ;;  %v1809_v33 = vadd.f32 %v1801_v47, %v1729_v7  ;;  %v1917_v38 = vpop.permute.xlu1 %1916 }
 0x24f   : > { %v2459_v5 = vrot.slane %v4098_v50, 4  ;;  %v4348_v24 = vrot.slane %v3920_v54, %v3830_v43  ;;  %v1882_v58 = vmul.f32 %v1862_v27, %v3810_v17  ;;  %v1386_v1 = vrot.slane %v1372_v36, %v3661_v23 }
 0x250   : > { %v1387_v12 = vcombine.high %v1379_v13, %v1379_v13  ;;  %v1710_v52 = vrot.slane %v1379_v13, %v3827_v28  ;;  %v1962_v44 = vmul.f32 %v1942_v11, %v1909_v42  ;;  %v1889_v16 = vadd.f32 %v1881_v61, %v1809_v33 }
 0x251   : > { %v1802_v19 = vmul.f32 %v4348_v24, %v3802_v25  ;;  %v2344_v30 = vcombine.low %v3929_v63, %v1379_v13  ;;  %v4349_v7 = vrot.slane %v3910_v46, %v3827_v28  ;;  %v4115_v49 = vcombine.high %v1386_v1, %v1386_v1 }
 0x252   : > { %v1562_v25 = vrot.slane %v1386_v1, %v3827_v28  ;;  %v1634_v17 = vrot.slane %v1386_v1, %v3830_v43  ;;  %v1790_v54 = vrot.slane %v1379_v13, %v3830_v43  ;;  %v1969_v31 = vadd.f32 %v1961_v10, %v1889_v16  ;;  %v4353_v16 = vld [vmem:[#allocation16_spill] sm:$0xff] }
 0x253   : > { %v1810_v40 = vadd.f32 %v1802_v19, %v1730_v6  ;;  %v1723_v4 = vmul.f32 %v4349_v7, %v3804_v26  ;;  %v1724_v42 = vmul.f32 %v1710_v52, %v3922_v55  ;;  %v2351_v61 = vrot.slane %v2344_v30, %v3661_v23 }
 0x254   : > { %v2358_v21 = vrot.slane %v1387_v12, %v3661_v23  ;;  %v1573_v47 = vmul.f32 %v1562_v25, %v3814_v34  ;;  %v1645_v26 = vmul.f32 %v1634_v17, %v3962_v60  ;;  %v1714_v27 = vrot.slane %v4115_v49, %v3827_v28  ;;  %2909 = vmatprep.mubr.msk.f32.mxu1 %vm1986_vm6, %v1969_v31  ;;  %v4355_v31 = vld [vmem:[#allocation17_spill] sm:$0xff] }
 0x255   : > { %v2360_v11 = vcombine.low %v1386_v1, %v4115_v49  ;;  %v1890_v10 = vadd.f32 %v1882_v58, %v1810_v40  ;;  %v1731_v55 = vadd.f32 %v1723_v4, %v3944_v62  ;;  %v4350_v13 = vrot.slane %v3910_v46, %v3830_v43  ;;  %v1913_v58 = vpop.permute.xlu0 %1912  ;;  %v1845_v1 = vpop.permute.xlu1 %1844 }
 0x256   : > { %v2359_v36 = vcombine.low %v2351_v61, %v2358_v21  ;;  %v4351_v60 = vrot.slane %v3908_v14, %v3827_v28  ;;  %v1946_v24 = vrot.slane %v3908_v14, %v3830_v43  ;;  %v4352_v19 = vrot.slane %v3929_v63, %v3827_v28 }
 0x257   : > { %v1803_v6 = vmul.f32 %v4350_v13, %v3823_v37  ;;  %v2367_v34 = vrot.slane %v2360_v11, %v3661_v23  ;;  %v1970_v46 = vadd.f32 %v1962_v44, %v1890_v10  ;;  %v1870_v7 = vrot.slane %v1387_v12, %v3827_v28 }
 0x258   : > { %v1883_v33 = vmul.f32 %v4351_v60, %v3973_v45  ;;  %v1572_v62 = vmul.f32 %v4352_v19, %v3834_v51  ;;  %2406 = vst.msk [vmem:[%s3897_s21 + $0x28] sm:$0x3f] %vm2400_vm5, %v2359_v36  ;;  %v2444_v37 = vsel %vm2400_vm5, %v2359_v36, 0.0  ;;  %v4354_v45 = vrot.slane %v3929_v63, %v3830_v43 }
 0x259   : > { %v1811_v52 = vadd.f32 %v1803_v6, %v1731_v55  ;;  %v2375_v14 = vcombine.low %v2367_v34, %v2374_v32  ;;  %v2445_v40 = vrot.slane %v2444_v37, 4  ;;  %v1963_v51 = vmul.f32 %v1946_v24, %v1913_v58  ;;  %2910 = vmatmul.mubr.msk.f32.gmra.mrb[8].mxu1 %vm1986_vm6, %v1970_v46  ;;  %v4356_v32 = vld [vmem:[#allocation18_spill] sm:$0xff]  ;;  %v1841_v13 = vpop.permute.xlu0 %1840  ;;  %v1921_v6 = vpop.permute.xlu1 %1920 }
 0x25a   : > { %v1644_v30 = vmul.f32 %v4354_v45, %v4353_v16  ;;  %v1950_v44 = vrot.slane %v1387_v12, %v3830_v43  ;;  %v1653_v17 = vadd.f32 %v1645_v26, %v1573_v47  ;;  %v1804_v61 = vmul.f32 %v1790_v54, %v4355_v31  ;;  %v2127_v31 = vld [vmem:[%s4320_s8 + $0x18] sm:$0xff] }
 0x25b   : > { %v1891_v4 = vadd.f32 %v1883_v33, %v1811_v52  ;;  %2407 = vst.msk [vmem:[%s3897_s21 + $0x30] sm:$0x3f] %vm2400_vm5, %v2375_v14  ;;  %v2446_v63 = vadd.f32 %v2445_v40, %v2444_v37  ;;  %v2451_v23 = vsel %vm2400_vm5, %v2375_v14, 0.0  ;;  %v1725_v21 = vmul.f32 %v1714_v27, %v4356_v32  ;;  %s2534_s21 = sshll.u32 %s4204_s30, 4  ;;  %s2535_s21 = int_to_ptr.vmem [resolvable:$true] %s2534_s21 }
 0x25c   : > { %v1652_v25 = vadd.f32 %v1644_v30, %v1572_v62  ;;  %v2452_v11 = vrot.slane %v2451_v23, 4  ;;  %v1884_v55 = vmul.f32 %v1870_v7, %v4011_v57  ;;  %v1964_v47 = vmul.f32 %v1950_v44, %v1917_v38  ;;  %s3131_s13 = scalar_lea.vmem %s2535_s21, 128  ;;  %p3138_p10 = scmp.lt.s32.totalorder %s2535_s21, %s3136_s15 }
 0x25d   : > { %v1971_v36 = vadd.f32 %v1963_v51, %v1891_v4  ;;  %v2447_v12 = vrot.slane %v2446_v63, 2  ;;  %v1733_v26 = vadd.f32 %v1725_v21, %v1653_v17  ;;  %v1794_v54 = vrot.slane %v4115_v49, %v3830_v43  ;;  %v1925_v37 = vpop.permute.xlu0 %1924  ;;  %v2126_v17 = vld [vmem:[%s4320_s8 + $0x10] sm:$0xff]  ;;  %p3132_p6 = scmp.ne.s32.totalorder %s2535_s21, %s3131_s13  ;;  %p3139_p0 = scmp.lt.s32.totalorder %s3137_s19, %s3131_s13 }
 0x25e   : > { %v1732_v10 = vadd.f32 %v1724_v42, %v1652_v25  ;;  %v2453_v34 = vadd.f32 %v2452_v11, %v2451_v23  ;;  %v1885_v42 = vmul.f32 %v1874_v41, %v1841_v13  ;;  %v1654_v57 = vadd.f32 %v4065_v48, %v4058_v56 }
 0x25f   : > { %2912 = vmatprep.mubr.msk.f32.mxu1 %vm1986_vm6, %v1971_v36  ;;  %v2448_v60 = vadd.f32 %v2447_v12, %v2446_v63  ;;  %v1805_v38 = vmul.f32 %v1794_v54, %v4043_v39  ;;  %v1965_v49 = vmul.f32 %v1954_v22, %v1921_v6  ;;  %v1878_v33 = vrot.slane %v4048_v35, %v3827_v28  ;;  %v2734_v63 = vld [vmem:[%s4319_s7] ss:$0 sm:$0xff]  ;;  %p3133_p13 = pnand %p3132_p6, %p4357_p12  ;;  %p3140_p2 = por %p3139_p0, %p3138_p10 }
 0x260   : > { %v1812_v27 = vadd.f32 %v1804_v61, %v1732_v10  ;;  %v1734_v19 = vadd.f32 %v4067_v29, %v1654_v57  ;;  %v1806_v41 = vmul.f32 %v1798_v0, %v4086_v2  ;;  %v1958_v56 = vrot.slane %v4048_v35, %v3830_v43 }
 0x261   : > { %v1813_v48 = vadd.f32 %v1805_v38, %v1733_v26  ;;  %v2443_v3 = vadd.f32 %v2442_v9, %v4020_v15  ;;  %v2449_v22 = vrot.slane %v2448_v60, 1  ;;  %v2454_v39 = vrot.slane %v2453_v34, 2  ;;  %p3134_p8 = pneg %p3133_p13 }
 0x262   : > { %v1892_v24 = vadd.f32 %v1884_v55, %v1812_v27  ;;  %v1814_v28 = vadd.f32 %v1806_v41, %v1734_v19  ;;  %v1886_v58 = vmul.f32 %v1878_v33, %v1845_v1  ;;  %v2460_v29 = vadd.f32 %v2459_v5, %v4098_v50 }
 0x263   : > { %v1893_v20 = vadd.f32 %v1885_v42, %v1813_v48  ;;  %v2450_v0 = vadd.f32 %v2449_v22, %v2448_v60  ;;  %v2455_v2 = vadd.f32 %v2454_v39, %v2453_v34  ;;  %v2467_v43 = vmul.f32 0.16666667, %v3990_v53  ;;  %p3141_p4 = pnand %p3140_p2, %p3134_p8 }
 0x264   : > { %v1972_v62 = vadd.f32 %v1964_v47, %v1892_v24  ;;  %v1894_v35 = vadd.f32 %v1886_v58, %v1814_v28  ;;  %v1966_v46 = vmul.f32 %v1958_v56, %v1925_v37  ;;  %v2461_v15 = vrot.slane %v2460_v29, 2 }
 0x265   : > { %v2469_v9 = vmul.f32 0.16666667, %v4088_v59  ;;  %v1973_v52 = vadd.f32 %v1965_v49, %v1893_v20  ;;  %v2456_v1 = vrot.slane %v2455_v2, 1  ;;  %v2471_v16 = vmul.f32 0.16666667, %v2450_v0 }
 0x266   : > { %2913 = vmatmul.mubr.msk.f32.gmra.mrb[10].mxu1 %vm1986_vm6, %v1972_v62  ;;  %v2483_v50 = vsel %vm2482_vm7, %v2467_v43, %v4013_v8  ;;  %v1974_v5 = vadd.f32 %v1966_v46, %v1894_v35  ;;  %v2462_v45 = vadd.f32 %v2461_v15, %v2460_v29  ;;  %v2470_v30 = vmul.f32 0.16666667, %v2443_v3 }
 0x267   : > { %v2485_v53 = vsel %vm2484_vm8, %v4070_v18, %v2483_v50  ;;  %2915 = vmatprep.mubr.msk.f32.mxu1 %vm1986_vm6, %v1973_v52  ;;  %v2457_v14 = vadd.f32 %v2456_v1, %v2455_v2  ;;  %v2974_v61 = vpack.c.bf16 %v2127_v31, %v2126_v17 }
 0x268   : > { %v2487_v40 = vsel %vm2486_vm9, %v2469_v9, %v2485_v53  ;;  %v2463_v59 = vrot.slane %v2462_v45, 1 }
 0x269   : > { %v2489_v51 = vsel %vm2488_vm10, %v2470_v30, %v2487_v40  ;;  %v2472_v7 = vmul.f32 0.16666667, %v2457_v14  ;;  %2975 = vmatprep.subr.bf16.mxu1 %v2974_v61 }
 0x26a   : > { %2916 = vmatmul.mubr.msk.f32.gmra.mrb[12].mxu1 %vm1986_vm6, %v1974_v5  ;;  %v2491_v8 = vsel %vm2490_vm11, %v2471_v16, %v2489_v51  ;;  %v2464_v4 = vadd.f32 %v2463_v59, %v2462_v45 }
 0x26b   : > { %v2493_v25 = vsel %vm2492_vm12, %v2472_v7, %v2491_v8  ;;  %2977 = vmatpush3.bf16.msra.mxu1 %v2974_v61 }
 0x26c   : > { %v2473_v44 = vmul.f32 0.16666667, %v2464_v4 }
 0x26e   : > { %v2495_v18 = vsel %vm2494_vm13, %v2473_v44, %v2493_v25 }
 0x26f   : > { %2497 = vst.msk [vmem:[%s4204_s30] sm:$0xff] %vm1986_vm6, %v2495_v18 }
 0x319   : > { %v2908_v23 = vpop.f32.mrb[6].mxu1 }
 0x31a   : > { %v2083_v32 = vadd.f32 %v2908_v23, %v2734_v63  ;;  %v2077_v21 = vpop.f32.mrb[7].mxu1 }
 0x31b   : > { %v2078_v11 = vadd.f32 %v2734_v63, %v2077_v21 }
 0x31c   : > { %v2117_v10 = vmax.f32 %v2083_v32, 0.0 }
 0x31d   : > { %v2116_v36 = vmax.f32 %v2078_v11, 0.0 }
 0x31f   : > { %2926 = vmatprep.mubr.msk.f32.mxu1 %vm1986_vm6, %v2116_v36 }
 0x320   : > { %2927 = vmatmul.mubr.msk.f32.vlgmr.msra.gmra.mrb[14].mxu1 %vm1986_vm6, %v2117_v10 }
 0x32c   : > { %v2911_v55 = vpop.f32.mrb[8].mxu1 }
 0x32d   : > { %v2093_v13 = vadd.f32 %v2911_v55, %v2734_v63  ;;  %v2087_v12 = vpop.f32.mrb[9].mxu1 }
 0x32e   : > { %v2088_v47 = vadd.f32 %v2734_v63, %v2087_v12 }
 0x32f   : > { %v2119_v54 = vmax.f32 %v2093_v13, 0.0 }
 0x330   : > { %v2118_v26 = vmax.f32 %v2088_v47, 0.0 }
 0x332   : > { %2929 = vmatprep.mubr.msk.f32.mxu1 %vm1986_vm6, %v2118_v26 }
 0x333   : > { %2930 = vmatmul.mubr.msk.f32.gmra.mrb[16].mxu1 %vm1986_vm6, %v2119_v54 }
 0x339   : > { %v2914_v6 = vpop.f32.mrb[10].mxu1 }
 0x33a   : > { %v2103_v34 = vadd.f32 %v2914_v6, %v2734_v63  ;;  %v2097_v27 = vpop.f32.mrb[11].mxu1 }
 0x33b   : > { %v2098_v42 = vadd.f32 %v2734_v63, %v2097_v27 }
 0x33c   : > { %v2121_v38 = vmax.f32 %v2103_v34, 0.0 }
 0x33d   : > { %v2120_v57 = vmax.f32 %v2098_v42, 0.0  ;;  %v2917_v60 = vpop.f32.mrb[12].mxu1 }
 0x33e   : > { %v2113_v49 = vadd.f32 %v2917_v60, %v2734_v63  ;;  %v2107_v33 = vpop.f32.mrb[13].mxu1 }
 0x33f   : > { %v2108_v24 = vadd.f32 %v2734_v63, %v2107_v33  ;;  %2932 = vmatprep.mubr.msk.f32.mxu1 %vm1986_vm6, %v2120_v57 }
 0x340   : > { %2933 = vmatmul.mubr.msk.f32.gmra.mrb[18].mxu1 %vm1986_vm6, %v2121_v38  ;;  %v2123_v41 = vmax.f32 %v2113_v49, 0.0 }
 0x341   : > { %v2122_v19 = vmax.f32 %v2108_v24, 0.0 }
 0x343   : > { %2935 = vmatprep.mubr.msk.f32.mxu1 %vm1986_vm6, %v2122_v19 }
 0x344   : > { %2936 = vmatmul.mubr.msk.f32.gmra.mrb[20].mxu1 %vm1986_vm6, %v2123_v41 }
 0x345   : > { %3144 = shalt.err (!%p3141_p4)
}
 0x346   : > { %s3145_s30 = scalar_lea.hbm %s4229_s18, 128  ;;  %s3149_s16 = scalar_lea.hbm %s4323_s11, 256 }
 0x347   : > { %p3146_p5 = scmp.ne.s32.totalorder %s4229_s18, %s3145_s30  ;;  %p3150_p1 = scmp.lt.u32.totalorder %s4229_s18, %s4323_s11 }
 0x348   : > { %p3151_p3 = scmp.lt.u32.totalorder %s3149_s16, %s3145_s30  ;;  %p3153_p6 = scmp.lt.u32.totalorder %s3145_s30, %s4229_s18 }
 0x349   : > { %p3147_p7 = pnand %p3146_p5, %p4357_p12 }
 0x34a   : > { %p3152_p11 = por %p3151_p3, %p3150_p1 }
 0x34b   : > { %p3148_p9 = pneg %p3147_p7 }
 0x34c   : > { %p3154_p13 = por %p3153_p6, %p3152_p11 }
 0x34e   : > { %p3155_p8 = pnand %p3154_p13, %p3148_p9 }
 0x350   : > { %3158 = shalt.err (!%p3155_p8)
}
 0x351   : > { %2983 = dma.vmem_to_hbm [thread:$0]  (%p4357_p12), %s2535_s21, 128, %s4229_s18, %s2512_s23   ;;  %v2743_v56 = vld [vmem:[%s4321_s9] ss:$0 sm:$0xff] }
 0x352   : > { %s2697_s13 = sshll.u32 %s3408_s17, 6  ;;  %s2759_s18 = sshll.u32 %s3331_s25, 10 }
 0x353   : > { %s466_s19 = scalar_lea.vmem [#allocation6], %s2697_s13  ;;  %s4264_s20 = scalar_lea.hbm %s4324_s12, %s2759_s18 }
 0x354   : > { %s2547_s21 = sshll.u32 %s466_s19, 4  ;;  %s2517_s25 = scalar_lea.sflag [#allocation7], %s3408_s17  ;;  %s4266_s21 = int_to_ptr.vmem [resolvable:$true] %s2547_s21 }
 0x355   : > { %s3159_s28 = scalar_lea.vmem %s4266_s21, 1024  ;;  %s3242_s16 = smov [#allocation6]  }
 0x356   : > { %p3160_p10 = scmp.ne.s32.totalorder %s4266_s21, %s3159_s28  ;;  %s3163_s26 = sshll.u32 %s3242_s16, 4  ;;  %s3164_s26 = int_to_ptr.vmem [resolvable:$false] %s3163_s26 }
 0x357   : > { %s3165_s29 = scalar_lea.vmem %s3164_s26, 2048  ;;  %p3166_p4 = scmp.lt.s32.totalorder %s4266_s21, %s3164_s26 }
 0x358   : > { %p3161_p0 = pnand %p3160_p10, %p4357_p12  ;;  %p3167_p5 = scmp.lt.s32.totalorder %s3165_s29, %s3159_s28 }
 0x35a   : > { %p3162_p2 = pneg %p3161_p0  ;;  %p3168_p7 = por %p3167_p5, %p3166_p4 }
 0x35c   : > { %p3169_p9 = pnand %p3168_p7, %p3162_p2 }
 0x3f3   : > { %v2928_v48 = vpop.f32.mrb[14].mxu1 }
 0x3f4   : > { %v2231_v3 = vadd.f32 %v2928_v48, %v2743_v56  ;;  %v2225_v22 = vpop.f32.mrb[15].mxu1 }
 0x3f5   : > { %v2226_v39 = vadd.f32 %v2743_v56, %v2225_v22 }
 0x3f6   : > { %2499 = vst.msk [vmem:[%s466_s19 + $0x8] sm:$0xff] %vm1986_vm6, %v2231_v3 }
 0x3f7   : > { %2498 = vst.msk [vmem:[%s466_s19] sm:$0xff] %vm1986_vm6, %v2226_v39 }
 0x406   : > { %v2931_v62 = vpop.f32.mrb[16].mxu1 }
 0x407   : > { %v2241_v28 = vadd.f32 %v2931_v62, %v2743_v56  ;;  %v2235_v58 = vpop.f32.mrb[17].mxu1 }
 0x408   : > { %v2236_v29 = vadd.f32 %v2743_v56, %v2235_v58 }
 0x409   : > { %2501 = vst.msk [vmem:[%s466_s19 + $0x18] sm:$0xff] %vm1986_vm6, %v2241_v28 }
 0x40a   : > { %2500 = vst.msk [vmem:[%s466_s19 + $0x10] sm:$0xff] %vm1986_vm6, %v2236_v29 }
 0x413   : > { %v2934_v37 = vpop.f32.mrb[18].mxu1 }
 0x414   : > { %v2251_v20 = vadd.f32 %v2934_v37, %v2743_v56  ;;  %v2245_v0 = vpop.f32.mrb[19].mxu1 }
 0x415   : > { %v2246_v2 = vadd.f32 %v2743_v56, %v2245_v0 }
 0x416   : > { %2503 = vst.msk [vmem:[%s466_s19 + $0x28] sm:$0xff] %vm1986_vm6, %v2251_v20 }
 0x417   : > { %2502 = vst.msk [vmem:[%s466_s19 + $0x20] sm:$0xff] %vm1986_vm6, %v2246_v2  ;;  %v2937_v43 = vpop.f32.mrb[20].mxu1 }
 0x418   : > { %v2261_v35 = vadd.f32 %v2937_v43, %v2743_v56  ;;  %v2255_v46 = vpop.f32.mrb[21].mxu1 }
 0x419   : > { %v2256_v15 = vadd.f32 %v2743_v56, %v2255_v46 }
 0x41a   : > { %2505 = vst.msk [vmem:[%s466_s19 + $0x38] sm:$0xff] %vm1986_vm6, %v2261_v35 }
 0x41b   : > { %2504 = vst.msk [vmem:[%s466_s19 + $0x30] sm:$0xff] %vm1986_vm6, %v2256_v15 }
 0x41c   : > { %3172 = shalt.err (!%p3169_p9)
}
 0x41d   : > { %s3173_s13 = scalar_lea.hbm %s4264_s20, 1024  ;;  %s3177_s19 = scalar_lea.hbm %s4324_s12, 2048 }
 0x41e   : > { %p3174_p1 = scmp.ne.s32.totalorder %s4264_s20, %s3173_s13  ;;  %p3178_p6 = scmp.lt.u32.totalorder %s4264_s20, %s4324_s12 }
 0x41f   : > { %p3179_p13 = scmp.lt.u32.totalorder %s3177_s19, %s3173_s13  ;;  %p3181_p10 = scmp.lt.u32.totalorder %s3173_s13, %s4264_s20 }
 0x420   : > { %p3175_p3 = pnand %p3174_p1, %p4357_p12 }
 0x421   : > { %p3180_p8 = por %p3179_p13, %p3178_p6 }
 0x422   : > { %p3176_p11 = pneg %p3175_p3 }
 0x423   : > { %p3182_p0 = por %p3181_p10, %p3180_p8 }
 0x425   : > { %p3183_p2 = pnand %p3182_p0, %p3176_p11 }
 0x427   : > { %3186 = shalt.err (!%p3183_p2)
}
 0x428   : > { %s3243_s30 = smov 128   ;;  %s3244_s28 = smov 8  }
 0x429   : > { %2984 = dma.vmem_to_hbm [thread:$0]  (%p4357_p12), %s4266_s21, 1024, %s4264_s20, %s2517_s25, %s3243_s30, %s3243_s30, %s3244_s28  }
 0x42a PF: > { %s4358_s16 = sld [smem:[#allocation11_spill]]  ;;  %s4359_s26 = sld [smem:[#allocation15_spill]] }
 0x42b   : > { %p4361_p5 = scmp.ge.s32.totalorder %s3229_s24, 2 }
 0x430   : > { %s2570_s29 = sand.u32 1, %s4358_s16   ;;  %p4360_p4 = scmp.ne.s32.totalorder %s4359_s26, 0 }
 0x431   : > { %s2571_s13 = scalar_lea.sflag [#allocation4], %s2570_s29 }
 0x432   : > { %p2992_p7 = pnand %p4361_p5, %p4360_p4 }
 0x434   : > { %3208 = dma.done.wait (!%p2992_p7), %s2571_s13, 128  }
 0x435   : > { %3210 = vsyncadd (!%p2992_p7), %s2571_s13, 4294967168  ;;  %s2580_s27 = scalar_lea.sflag [#allocation7], %s2570_s29 }
 0x436   : > { %3212 = dma.done.wait (!%p2992_p7), %s2580_s27, 1024  }
 0x437   : > { %3214 = vsyncadd (!%p2992_p7), %s2580_s27, 4294966272  ;;  %s4362_s24 = sld [smem:[#allocation13_spill]]  ;;  %s4363_s15 = sld [smem:[#allocation12_spill]] }
 0x438   : > { %s4364_s23 = sld [smem:[#allocation14_spill]]  ;;  %s4365_s21 = smov %s3221_s22 }
 0x43d   : > { %p29_p12 = scmp.ge.s32.totalorder %s4362_s24, 4   ;;  %s4366_s22 = smov %s4363_s15 }
 0x43f   :  { %31 = sbr.rel (!%p29_p12) target bundleno = 7 (0x7), region = 137 }
 0x446   :  { %2585 = vsyncpa [#allocation3], 1 }
 0x447   :  { %2587 = vsyncpa [#allocation3 + $0x1], 1 }
 0x448   :  { %2588 = vsyncpa [#allocation4], 1 }
 0x449   :  { %2590 = vsyncpa [#allocation4 + $0x1], 1 }
 0x44a   :  { %2591 = vsyncpa [#allocation7], 1 }
 0x44b   :  { %2593 = vsyncpa [#allocation7 + $0x1], 1 }

</bundles_post_ra>
